<compile_context>
chip_gen: v5e
topology: v5e:2x2
jax: 0.10.0
libtpu: 0.0.40
codegen_flags: <defaults>
</compile_context>

<pallas_src>
import jax
import jax.numpy as jnp
from jax.experimental import pallas as pl
from jax.experimental.pallas import tpu as pltpu

K = 4                  # ConvTranspose2d kernel_size
PAD_EQ = K - 1 - 1     # equivalent forward-conv padding (= 2) for padding=1
BN_EPS = 1e-5


def _round_up(x, m):
    return (x + m - 1) // m * m


# ---------------------------------------------------------------------------
# Fused (ConvTranspose2d => BN(train) => ReLU) stage kernel
# ---------------------------------------------------------------------------
def _make_stage_kernel(kk, cip, Wp, Mq_pad, cnt):
    inv_cnt = 1.0 / cnt

    def kernel(x_ref, w_ref, g_ref, be_ref, mask_ref, o_ref,
               y_s, im_s, s1_s, s2_s):
        p = pl.program_id(0)   # phase: 0 conv+sum, 1 centered sumsq, 2 BN+ReLU
        n = pl.program_id(1)   # image index
        mask = mask_ref[...]                                # (1, Mq_pad) f32

        # ---- phase 0: conv via in-kernel im2col + single MXU matmul + sum ----
        @pl.when(p == 0)
        def _phase_conv():
            x = x_ref[0]                                    # (Cip, Spad) bf16
            # Stack the K*K lane-offset taps along the contraction (sublane) axis.
            for t in range(kk * kk):
                kh, kw = divmod(t, kk)
                off = kh * Wp + kw                          # static lane offset
                im_s[pl.ds(t * cip, cip), :] = x[:, off:off + Mq_pad]
            # One (Co, K*K*Cip) @ (K*K*Cip, Mq_pad) bf16 matmul, f32 accumulate.
            acc = jnp.dot(w_ref[...], im_s[...],
                          preferred_element_type=jnp.float32)
            y_s[n] = acc                                    # (Co, Mq_pad) f32, VMEM-resident

            @pl.when(n == 0)
            def _():
                s1_s[...] = jnp.zeros_like(s1_s)
            s1_s[...] += jnp.sum(acc * mask, axis=1, keepdims=True)

        # ---- phase 1: centered sum of squares (two-pass variance) ----
        @pl.when(p == 1)
        def _phase_var():
            mean = s1_s[...] * inv_cnt                      # (Co, 1)
            d = (y_s[n] - mean) * mask

            @pl.when(n == 0)
            def _():
                s2_s[...] = jnp.zeros_like(s2_s)
            s2_s[...] += jnp.sum(d * d, axis=1, keepdims=True)

        # ---- phase 2: BN affine + ReLU, lane-dense store ----
        @pl.when(p == 2)
        def _phase_apply():
            mean = s1_s[...] * inv_cnt
            var = s2_s[...] * inv_cnt
            scale = g_ref[...] * jax.lax.rsqrt(var + BN_EPS)
            shift = be_ref[...] - mean * scale
            o_ref[0] = jnp.maximum(y_s[n] * scale + shift, 0.0).astype(o_ref.dtype)

    return kernel


def _deconv_bn_relu_stage(x_nchw, wt, gamma, beta, out_dtype=jnp.float32):
    """One ConvTranspose2d(k=4, s=1, p=1, bias folded away) => BatchNorm(train) => ReLU."""
    N, Ci, H, W = x_nchw.shape
    Co = wt.shape[1]
    Ho, Wo = H + 1, W + 1                       # (H-1)*1 - 2*1 + 4
    Hp, Wp = H + 2 * PAD_EQ, W + 2 * PAD_EQ
    Cip = _round_up(Ci, 8)                      # pad contraction dim for the MXU
    KKC = K * K * Cip                           # stacked contraction depth
    Mq = Ho * Wp                                # "wide" output grid (Ho x Wp), flattened
    Mq_pad = _round_up(Mq, 128)                 # lane-dense output width
    max_off = (K - 1) * Wp + (K - 1)
    Spad = _round_up(max(Mq_pad + max_off, Hp * Wp), 128)   # flattened/padded input width

    # --- tiny JAX prep glue (pad + flatten, ~1x the activation size) ---
    xp = jnp.pad(x_nchw, ((0, 0), (0, 0), (PAD_EQ, PAD_EQ), (PAD_EQ, PAD_EQ)))
    xf = xp.reshape(N, Ci, Hp * Wp)
    xf = jnp.pad(xf, ((0, 0), (0, Cip - Ci), (0, Spad - Hp * Wp)))
    xf = xf.astype(jnp.bfloat16)

    # transposed-conv weight -> equivalent forward-conv taps (spatial flip, swap io),
    # then stacked into a single (Co, K*K*Cip) matrix matching the im2col row order.
    w_flip = wt[:, :, ::-1, ::-1]                               # (Ci, Co, K, K)
    w_taps = jnp.transpose(w_flip, (2, 3, 1, 0))                # (K, K, Co, Ci)
    w_taps = jnp.pad(w_taps, ((0, 0), (0, 0), (0, 0), (0, Cip - Ci)))
    w_big = jnp.transpose(w_taps.reshape(K * K, Co, Cip), (1, 0, 2)).reshape(Co, KKC)
    w_big = w_big.astype(jnp.bfloat16)

    # valid-pixel mask over the wide (Ho x Wp) grid (only used for BN statistics)
    q = jnp.arange(Mq_pad, dtype=jnp.int32)
    mask = ((q < Mq) & (q % Wp < Wo)).astype(jnp.float32).reshape(1, Mq_pad)

    g2 = gamma.reshape(Co, 1).astype(jnp.float32)
    b2 = beta.reshape(Co, 1).astype(jnp.float32)

    cnt = float(N * Ho * Wo)
    kernel = _make_stage_kernel(K, Cip, Wp, Mq_pad, cnt)

    y = pl.pallas_call(
        kernel,
        out_shape=jax.ShapeDtypeStruct((N, Co, Mq_pad), out_dtype),
        grid=(3, N),   # (phase, image) — phase outer so BN stats see all images
        in_specs=[
            # image: only needed in phase 0 -> keep block index constant afterwards
            pl.BlockSpec((1, Cip, Spad),
                         lambda p, n: (jnp.where(p == 0, n, 0), 0, 0)),
            pl.BlockSpec((Co, KKC), lambda p, n: (0, 0)),              # resident taps
            pl.BlockSpec((Co, 1), lambda p, n: (0, 0)),                # gamma
            pl.BlockSpec((Co, 1), lambda p, n: (0, 0)),                # beta
            pl.BlockSpec((1, Mq_pad), lambda p, n: (0, 0)),            # valid mask
        ],
        # output written only in phase 2 -> single HBM write-back per image
        out_specs=pl.BlockSpec((1, Co, Mq_pad),
                               lambda p, n: (jnp.where(p == 2, n, 0), 0, 0)),
        scratch_shapes=[
            pltpu.VMEM((N, Co, Mq_pad), jnp.float32),   # conv output, VMEM-resident
            pltpu.VMEM((KKC, Mq_pad), jnp.bfloat16),    # stacked im2col block
            pltpu.VMEM((Co, 1), jnp.float32),           # per-channel sum
            pltpu.VMEM((Co, 1), jnp.float32),           # per-channel centered sumsq
        ],
        compiler_params=pltpu.CompilerParams(
            dimension_semantics=("arbitrary", "arbitrary")),
        # TODO(synk): on v7x, make the image axis "parallel" with per-core partial
        # s1/s2 outputs (reduced in JAX) to shard the conv over both TensorCores.
    )(xf, w_big, g2, b2, mask)

    # crop the wide/padded lanes back to the true (N, Co, Ho, Wo) NCHW activation
    y = y[:, :, :Mq].reshape(N, Co, Ho, Wp)[:, :, :, :Wo]
    return y


# ---------------------------------------------------------------------------
# Full UpBlock forward
# ---------------------------------------------------------------------------
def up_block_forward(x_nchw, params):
    # Conv biases (params["b1"]/["b2"]) are folded away: a per-channel constant is
    # exactly cancelled by training-mode BatchNorm mean subtraction.
    h = _deconv_bn_relu_stage(x_nchw, params["w1"], params["g1"], params["be1"],
                              out_dtype=jnp.bfloat16)   # fed to bf16 MXU anyway
    h = _deconv_bn_relu_stage(h, params["w2"], params["g2"], params["be2"],
                              out_dtype=jnp.float32)
    # nn.Upsample(scale_factor=2, mode='nearest') — pure index duplication (glue).
    # TODO(synk): fold the 2x duplication into the stage-2 store path (needs a
    # lane-interleave relayout inside the kernel).
    N, C, Hh, Ww = h.shape
    h = jnp.broadcast_to(h[:, :, :, None, :, None], (N, C, Hh, 2, Ww, 2))
    return h.reshape(N, C, 2 * Hh, 2 * Ww)                 # already NCHW


def init_params(key, in_ch):
    mid = 2 * in_ch
    k1, k2, k3, k4 = jax.random.split(key, 4)
    return {
        # ConvTranspose2d weights: (in_channels, out_channels, kH, kW)
        "w1": 0.1 * jax.random.normal(k1, (in_ch, mid, K, K), jnp.float32),
        "b1": 0.1 * jax.random.normal(k2, (mid,), jnp.float32),   # unused: cancelled by BN
        "g1": jnp.ones((mid,), jnp.float32),
        "be1": jnp.zeros((mid,), jnp.float32),
        "w2": 0.1 * jax.random.normal(k3, (mid, in_ch, K, K), jnp.float32),
        "b2": 0.1 * jax.random.normal(k4, (in_ch,), jnp.float32),  # unused: cancelled by BN
        "g2": jnp.ones((in_ch,), jnp.float32),
        "be2": jnp.zeros((in_ch,), jnp.float32),
    }


if __name__ == "__main__":
    in_ch = 4
    N, H, W = 2, 16, 16
    key = jax.random.PRNGKey(0)
    kx, kp = jax.random.split(key)
    x = jax.random.normal(kx, (N, in_ch, H, W), jnp.float32)
    params = init_params(kp, in_ch)

    out = jax.jit(up_block_forward)(x, params)
    out = jax.block_until_ready(out)

    # UpBlock output: ConvT twice (H+2) then nearest x2 upsample -> (N, in_ch, 2*(H+2), 2*(W+2))
    assert out.shape == (N, in_ch, 2 * (H + 2), 2 * (W + 2)), out.shape
    assert out.dtype == jnp.float32
    assert bool(jnp.all(jnp.isfinite(out)))
    print("KERNEL_OK")
</pallas_src>

<mosaic_0001>
module attributes {stable_mosaic.version = 11 : i64} {
  func.func @kernel(%arg0: i32, %arg1: i32, %arg2: memref<1x8x512xbf16, #tpu.memory_space<vmem>>, %arg3: memref<8x128xbf16, #tpu.memory_space<vmem>>, %arg4: memref<8x1xf32, #tpu.memory_space<vmem>>, %arg5: memref<8x1xf32, #tpu.memory_space<vmem>>, %arg6: memref<1x384xf32, #tpu.memory_space<vmem>>, %arg7: memref<1x8x384xbf16, #tpu.memory_space<vmem>>, %arg8: memref<2x8x384xf32, #tpu.memory_space<vmem>>, %arg9: memref<128x384xbf16, #tpu.memory_space<vmem>>, %arg10: memref<8x1xf32, #tpu.memory_space<vmem>>, %arg11: memref<8x1xf32, #tpu.memory_space<vmem>>) attributes {dimension_semantics = [#tpu.dimension_semantics<arbitrary>, #tpu.dimension_semantics<arbitrary>], iteration_bounds = array<i64: 3, 2>, scalar_prefetch = 0 : i64, scratch_operands = 4 : i64, tpu.core_type = #tpu.core_type<tc>, window_params = [{transform_indices = @transform_0, window_bounds = array<i64: 1, 8, 512>}, {pipeline_mode = #tpu.pipeline_mode<synchronous>, transform_indices = @transform_1, window_bounds = array<i64: 8, 128>}, {pipeline_mode = #tpu.pipeline_mode<synchronous>, transform_indices = @transform_2, window_bounds = array<i64: 8, 1>}, {pipeline_mode = #tpu.pipeline_mode<synchronous>, transform_indices = @transform_3, window_bounds = array<i64: 8, 1>}, {pipeline_mode = #tpu.pipeline_mode<synchronous>, transform_indices = @transform_4, window_bounds = array<i64: 1, 384>}, {transform_indices = @transform_5, window_bounds = array<i64: 1, 8, 384>}]} {
    %c0 = arith.constant 0 : index
    %c0_0 = arith.constant 0 : index
    %0 = vector.load %arg6[%c0, %c0_0] : memref<1x384xf32, #tpu.memory_space<vmem>>, vector<1x384xf32>
    %c0_i32 = arith.constant 0 : i32
    %1 = arith.cmpi eq, %arg0, %c0_i32 : i32
    %2 = arith.extui %1 : i1 to i32
    %c0_i32_1 = arith.constant 0 : i32
    %3 = arith.cmpi ne, %2, %c0_i32_1 : i32
    scf.if %3 {
      %c0_4 = arith.constant 0 : index
      %c0_5 = arith.constant 0 : index
      %c0_6 = arith.constant 0 : index
      %10 = vector.load %arg2[%c0_4, %c0_5, %c0_6] : memref<1x8x512xbf16, #tpu.memory_space<vmem>>, vector<1x8x512xbf16>
      %11 = vector.shape_cast %10 : vector<1x8x512xbf16> to vector<8x512xbf16>
      %12 = vector.extract_strided_slice %11 {offsets = [0, 0], sizes = [8, 384], strides = [1, 1]} : vector<8x512xbf16> to vector<8x384xbf16>
      %c0_7 = arith.constant 0 : index
      %c0_8 = arith.constant 0 : index
      %13 = vector.load %arg9[%c0_7, %c0_8] : memref<128x384xbf16, #tpu.memory_space<vmem>>, vector<8x384xbf16>
      tpu.vector_store %arg9[%c0_7, %c0_8], %12 {strides = array<i32>} : memref<128x384xbf16, #tpu.memory_space<vmem>>, vector<8x384xbf16>,
      %14 = vector.extract_strided_slice %11 {offsets = [0, 1], sizes = [8, 384], strides = [1, 1]} : vector<8x512xbf16> to vector<8x384xbf16>
      %c8 = arith.constant 8 : index
      %c0_9 = arith.constant 0 : index
      %15 = vector.load %arg9[%c8, %c0_9] : memref<128x384xbf16, #tpu.memory_space<vmem>>, vector<8x384xbf16>
      tpu.vector_store %arg9[%c8, %c0_9], %14 {strides = array<i32>} : memref<128x384xbf16, #tpu.memory_space<vmem>>, vector<8x384xbf16>,
      %16 = vector.extract_strided_slice %11 {offsets = [0, 2], sizes = [8, 384], strides = [1, 1]} : vector<8x512xbf16> to vector<8x384xbf16>
      %c16 = arith.constant 16 : index
      %c0_10 = arith.constant 0 : index
      %17 = vector.load %arg9[%c16, %c0_10] : memref<128x384xbf16, #tpu.memory_space<vmem>>, vector<8x384xbf16>
      tpu.vector_store %arg9[%c16, %c0_10], %16 {strides = array<i32>} : memref<128x384xbf16, #tpu.memory_space<vmem>>, vector<8x384xbf16>,
      %18 = vector.extract_strided_slice %11 {offsets = [0, 3], sizes = [8, 384], strides = [1, 1]} : vector<8x512xbf16> to vector<8x384xbf16>
      %c24 = arith.constant 24 : index
      %c0_11 = arith.constant 0 : index
      %19 = vector.load %arg9[%c24, %c0_11] : memref<128x384xbf16, #tpu.memory_space<vmem>>, vector<8x384xbf16>
      tpu.vector_store %arg9[%c24, %c0_11], %18 {strides = array<i32>} : memref<128x384xbf16, #tpu.memory_space<vmem>>, vector<8x384xbf16>,
      %20 = vector.extract_strided_slice %11 {offsets = [0, 20], sizes = [8, 384], strides = [1, 1]} : vector<8x512xbf16> to vector<8x384xbf16>
      %c32 = arith.constant 32 : index
      %c0_12 = arith.constant 0 : index
      %21 = vector.load %arg9[%c32, %c0_12] : memref<128x384xbf16, #tpu.memory_space<vmem>>, vector<8x384xbf16>
      tpu.vector_store %arg9[%c32, %c0_12], %20 {strides = array<i32>} : memref<128x384xbf16, #tpu.memory_space<vmem>>, vector<8x384xbf16>,
      %22 = vector.extract_strided_slice %11 {offsets = [0, 21], sizes = [8, 384], strides = [1, 1]} : vector<8x512xbf16> to vector<8x384xbf16>
      %c40 = arith.constant 40 : index
      %c0_13 = arith.constant 0 : index
      %23 = vector.load %arg9[%c40, %c0_13] : memref<128x384xbf16, #tpu.memory_space<vmem>>, vector<8x384xbf16>
      tpu.vector_store %arg9[%c40, %c0_13], %22 {strides = array<i32>} : memref<128x384xbf16, #tpu.memory_space<vmem>>, vector<8x384xbf16>,
      %24 = vector.extract_strided_slice %11 {offsets = [0, 22], sizes = [8, 384], strides = [1, 1]} : vector<8x512xbf16> to vector<8x384xbf16>
      %c48 = arith.constant 48 : index
      %c0_14 = arith.constant 0 : index
      %25 = vector.load %arg9[%c48, %c0_14] : memref<128x384xbf16, #tpu.memory_space<vmem>>, vector<8x384xbf16>
      tpu.vector_store %arg9[%c48, %c0_14], %24 {strides = array<i32>} : memref<128x384xbf16, #tpu.memory_space<vmem>>, vector<8x384xbf16>,
      %26 = vector.extract_strided_slice %11 {offsets = [0, 23], sizes = [8, 384], strides = [1, 1]} : vector<8x512xbf16> to vector<8x384xbf16>
      %c56 = arith.constant 56 : index
      %c0_15 = arith.constant 0 : index
      %27 = vector.load %arg9[%c56, %c0_15] : memref<128x384xbf16, #tpu.memory_space<vmem>>, vector<8x384xbf16>
      tpu.vector_store %arg9[%c56, %c0_15], %26 {strides = array<i32>} : memref<128x384xbf16, #tpu.memory_space<vmem>>, vector<8x384xbf16>,
      %28 = vector.extract_strided_slice %11 {offsets = [0, 40], sizes = [8, 384], strides = [1, 1]} : vector<8x512xbf16> to vector<8x384xbf16>
      %c64 = arith.constant 64 : index
      %c0_16 = arith.constant 0 : index
      %29 = vector.load %arg9[%c64, %c0_16] : memref<128x384xbf16, #tpu.memory_space<vmem>>, vector<8x384xbf16>
      tpu.vector_store %arg9[%c64, %c0_16], %28 {strides = array<i32>} : memref<128x384xbf16, #tpu.memory_space<vmem>>, vector<8x384xbf16>,
      %30 = vector.extract_strided_slice %11 {offsets = [0, 41], sizes = [8, 384], strides = [1, 1]} : vector<8x512xbf16> to vector<8x384xbf16>
      %c72 = arith.constant 72 : index
      %c0_17 = arith.constant 0 : index
      %31 = vector.load %arg9[%c72, %c0_17] : memref<128x384xbf16, #tpu.memory_space<vmem>>, vector<8x384xbf16>
      tpu.vector_store %arg9[%c72, %c0_17], %30 {strides = array<i32>} : memref<128x384xbf16, #tpu.memory_space<vmem>>, vector<8x384xbf16>,
      %32 = vector.extract_strided_slice %11 {offsets = [0, 42], sizes = [8, 384], strides = [1, 1]} : vector<8x512xbf16> to vector<8x384xbf16>
      %c80 = arith.constant 80 : index
      %c0_18 = arith.constant 0 : index
      %33 = vector.load %arg9[%c80, %c0_18] : memref<128x384xbf16, #tpu.memory_space<vmem>>, vector<8x384xbf16>
      tpu.vector_store %arg9[%c80, %c0_18], %32 {strides = array<i32>} : memref<128x384xbf16, #tpu.memory_space<vmem>>, vector<8x384xbf16>,
      %34 = vector.extract_strided_slice %11 {offsets = [0, 43], sizes = [8, 384], strides = [1, 1]} : vector<8x512xbf16> to vector<8x384xbf16>
      %c88 = arith.constant 88 : index
      %c0_19 = arith.constant 0 : index
      %35 = vector.load %arg9[%c88, %c0_19] : memref<128x384xbf16, #tpu.memory_space<vmem>>, vector<8x384xbf16>
      tpu.vector_store %arg9[%c88, %c0_19], %34 {strides = array<i32>} : memref<128x384xbf16, #tpu.memory_space<vmem>>, vector<8x384xbf16>,
      %36 = vector.extract_strided_slice %11 {offsets = [0, 60], sizes = [8, 384], strides = [1, 1]} : vector<8x512xbf16> to vector<8x384xbf16>
      %c96 = arith.constant 96 : index
      %c0_20 = arith.constant 0 : index
      %37 = vector.load %arg9[%c96, %c0_20] : memref<128x384xbf16, #tpu.memory_space<vmem>>, vector<8x384xbf16>
      tpu.vector_store %arg9[%c96, %c0_20], %36 {strides = array<i32>} : memref<128x384xbf16, #tpu.memory_space<vmem>>, vector<8x384xbf16>,
      %38 = vector.extract_strided_slice %11 {offsets = [0, 61], sizes = [8, 384], strides = [1, 1]} : vector<8x512xbf16> to vector<8x384xbf16>
      %c104 = arith.constant 104 : index
      %c0_21 = arith.constant 0 : index
      %39 = vector.load %arg9[%c104, %c0_21] : memref<128x384xbf16, #tpu.memory_space<vmem>>, vector<8x384xbf16>
      tpu.vector_store %arg9[%c104, %c0_21], %38 {strides = array<i32>} : memref<128x384xbf16, #tpu.memory_space<vmem>>, vector<8x384xbf16>,
      %40 = vector.extract_strided_slice %11 {offsets = [0, 62], sizes = [8, 384], strides = [1, 1]} : vector<8x512xbf16> to vector<8x384xbf16>
      %c112 = arith.constant 112 : index
      %c0_22 = arith.constant 0 : index
      %41 = vector.load %arg9[%c112, %c0_22] : memref<128x384xbf16, #tpu.memory_space<vmem>>, vector<8x384xbf16>
      tpu.vector_store %arg9[%c112, %c0_22], %40 {strides = array<i32>} : memref<128x384xbf16, #tpu.memory_space<vmem>>, vector<8x384xbf16>,
      %42 = vector.extract_strided_slice %11 {offsets = [0, 63], sizes = [8, 384], strides = [1, 1]} : vector<8x512xbf16> to vector<8x384xbf16>
      %c120 = arith.constant 120 : index
      %c0_23 = arith.constant 0 : index
      %43 = vector.load %arg9[%c120, %c0_23] : memref<128x384xbf16, #tpu.memory_space<vmem>>, vector<8x384xbf16>
      tpu.vector_store %arg9[%c120, %c0_23], %42 {strides = array<i32>} : memref<128x384xbf16, #tpu.memory_space<vmem>>, vector<8x384xbf16>,
      %c0_24 = arith.constant 0 : index
      %c0_25 = arith.constant 0 : index
      %44 = vector.load %arg3[%c0_24, %c0_25] : memref<8x128xbf16, #tpu.memory_space<vmem>>, vector<8x128xbf16>
      %c0_26 = arith.constant 0 : index
      %c0_27 = arith.constant 0 : index
      %45 = vector.load %arg9[%c0_26, %c0_27] : memref<128x384xbf16, #tpu.memory_space<vmem>>, vector<128x384xbf16>
      %cst = arith.constant dense<0.000000e+00> : vector<8x384xf32>
      %46 = tpu.matmul %44, %45, %cst {dimension_numbers = #tpu.dot_dimension_numbers<[1], [0], [0], [1], [0, 0, 1, 1], [], []>} : vector<8x128xbf16>, vector<128x384xbf16>, vector<8x384xf32> -> vector<8x384xf32>
      %47 = arith.index_cast %arg1 : i32 to index
      %c0_28 = arith.constant 0 : index
      %c0_29 = arith.constant 0 : index
      %48 = vector.load %arg8[%47, %c0_28, %c0_29] : memref<2x8x384xf32, #tpu.memory_space<vmem>>, vector<1x8x384xf32>
      %49 = vector.shape_cast %48 : vector<1x8x384xf32> to vector<8x384xf32>
      %50 = vector.shape_cast %46 : vector<8x384xf32> to vector<1x8x384xf32>
      tpu.vector_store %arg8[%47, %c0_28, %c0_29], %50 {strides = array<i32>} : memref<2x8x384xf32, #tpu.memory_space<vmem>>, vector<1x8x384xf32>,
      %c0_i32_30 = arith.constant 0 : i32
      %51 = arith.cmpi eq, %arg1, %c0_i32_30 : i32
      %52 = arith.extui %51 : i1 to i32
      %c0_i32_31 = arith.constant 0 : i32
      %53 = arith.cmpi ne, %52, %c0_i32_31 : i32
      scf.if %53 {
        %cst_37 = arith.constant 0.000000e+00 : f32
        %61 = vector.broadcast %cst_37 : f32 to vector<8x1xf32>
        %c0_38 = arith.constant 0 : index
        %c0_39 = arith.constant 0 : index
        %62 = vector.load %arg10[%c0_38, %c0_39] : memref<8x1xf32, #tpu.memory_space<vmem>>, vector<8x1xf32>
        tpu.vector_store %arg10[%c0_38, %c0_39], %61 {strides = array<i32>} : memref<8x1xf32, #tpu.memory_space<vmem>>, vector<8x1xf32>,
      } else {
      }
      %c0_32 = arith.constant 0 : index
      %c0_33 = arith.constant 0 : index
      %54 = vector.load %arg10[%c0_32, %c0_33] : memref<8x1xf32, #tpu.memory_space<vmem>>, vector<8x1xf32>
      %55 = vector.broadcast %0 : vector<1x384xf32> to vector<8x384xf32>
      %56 = arith.mulf %46, %55 : vector<8x384xf32>
      %cst_34 = arith.constant dense<0.000000e+00> : vector<8xf32>
      %57 = vector.multi_reduction <add>, %56, %cst_34 [1] : vector<8x384xf32> to vector<8xf32>
      %58 = vector.shape_cast %57 : vector<8xf32> to vector<8x1xf32>
      %59 = arith.addf %54, %58 : vector<8x1xf32>
      %c0_35 = arith.constant 0 : index
      %c0_36 = arith.constant 0 : index
      %60 = vector.load %arg10[%c0_35, %c0_36] : memref<8x1xf32, #tpu.memory_space<vmem>>, vector<8x1xf32>
      tpu.vector_store %arg10[%c0_35, %c0_36], %59 {strides = array<i32>} : memref<8x1xf32, #tpu.memory_space<vmem>>, vector<8x1xf32>,
    } else {
    }
    %c1_i32 = arith.constant 1 : i32
    %4 = arith.cmpi eq, %arg0, %c1_i32 : i32
    %5 = arith.extui %4 : i1 to i32
    %c0_i32_2 = arith.constant 0 : i32
    %6 = arith.cmpi ne, %5, %c0_i32_2 : i32
    scf.if %6 {
      %c0_4 = arith.constant 0 : index
      %c0_5 = arith.constant 0 : index
      %10 = vector.load %arg10[%c0_4, %c0_5] : memref<8x1xf32, #tpu.memory_space<vmem>>, vector<8x1xf32>
      %cst = arith.constant 0.00173010386 : f32
      %11 = vector.broadcast %cst : f32 to vector<8x1xf32>
      %12 = arith.mulf %10, %11 : vector<8x1xf32>
      %13 = arith.index_cast %arg1 : i32 to index
      %c0_6 = arith.constant 0 : index
      %c0_7 = arith.constant 0 : index
      %14 = vector.load %arg8[%13, %c0_6, %c0_7] : memref<2x8x384xf32, #tpu.memory_space<vmem>>, vector<1x8x384xf32>
      %15 = vector.shape_cast %14 : vector<1x8x384xf32> to vector<8x384xf32>
      %16 = vector.broadcast %12 : vector<8x1xf32> to vector<8x384xf32>
      %17 = arith.subf %15, %16 : vector<8x384xf32>
      %18 = vector.broadcast %0 : vector<1x384xf32> to vector<8x384xf32>
      %19 = arith.mulf %17, %18 : vector<8x384xf32>
      %c0_i32_8 = arith.constant 0 : i32
      %20 = arith.cmpi eq, %arg1, %c0_i32_8 : i32
      %21 = arith.extui %20 : i1 to i32
      %c0_i32_9 = arith.constant 0 : i32
      %22 = arith.cmpi ne, %21, %c0_i32_9 : i32
      scf.if %22 {
        %cst_15 = arith.constant 0.000000e+00 : f32
        %29 = vector.broadcast %cst_15 : f32 to vector<8x1xf32>
        %c0_16 = arith.constant 0 : index
        %c0_17 = arith.constant 0 : index
        %30 = vector.load %arg11[%c0_16, %c0_17] : memref<8x1xf32, #tpu.memory_space<vmem>>, vector<8x1xf32>
        tpu.vector_store %arg11[%c0_16, %c0_17], %29 {strides = array<i32>} : memref<8x1xf32, #tpu.memory_space<vmem>>, vector<8x1xf32>,
      } else {
      }
      %c0_10 = arith.constant 0 : index
      %c0_11 = arith.constant 0 : index
      %23 = vector.load %arg11[%c0_10, %c0_11] : memref<8x1xf32, #tpu.memory_space<vmem>>, vector<8x1xf32>
      %24 = arith.mulf %19, %19 : vector<8x384xf32>
      %cst_12 = arith.constant dense<0.000000e+00> : vector<8xf32>
      %25 = vector.multi_reduction <add>, %24, %cst_12 [1] : vector<8x384xf32> to vector<8xf32>
      %26 = vector.shape_cast %25 : vector<8xf32> to vector<8x1xf32>
      %27 = arith.addf %23, %26 : vector<8x1xf32>
      %c0_13 = arith.constant 0 : index
      %c0_14 = arith.constant 0 : index
      %28 = vector.load %arg11[%c0_13, %c0_14] : memref<8x1xf32, #tpu.memory_space<vmem>>, vector<8x1xf32>
      tpu.vector_store %arg11[%c0_13, %c0_14], %27 {strides = array<i32>} : memref<8x1xf32, #tpu.memory_space<vmem>>, vector<8x1xf32>,
    } else {
    }
    %c2_i32 = arith.constant 2 : i32
    %7 = arith.cmpi eq, %arg0, %c2_i32 : i32
    %8 = arith.extui %7 : i1 to i32
    %c0_i32_3 = arith.constant 0 : i32
    %9 = arith.cmpi ne, %8, %c0_i32_3 : i32
    scf.if %9 {
      %c0_4 = arith.constant 0 : index
      %c0_5 = arith.constant 0 : index
      %10 = vector.load %arg10[%c0_4, %c0_5] : memref<8x1xf32, #tpu.memory_space<vmem>>, vector<8x1xf32>
      %cst = arith.constant 0.00173010386 : f32
      %11 = vector.broadcast %cst : f32 to vector<8x1xf32>
      %12 = arith.mulf %10, %11 : vector<8x1xf32>
      %c0_6 = arith.constant 0 : index
      %c0_7 = arith.constant 0 : index
      %13 = vector.load %arg11[%c0_6, %c0_7] : memref<8x1xf32, #tpu.memory_space<vmem>>, vector<8x1xf32>
      %cst_8 = arith.constant 0.00173010386 : f32
      %14 = vector.broadcast %cst_8 : f32 to vector<8x1xf32>
      %15 = arith.mulf %13, %14 : vector<8x1xf32>
      %c0_9 = arith.constant 0 : index
      %c0_10 = arith.constant 0 : index
      %16 = vector.load %arg4[%c0_9, %c0_10] : memref<8x1xf32, #tpu.memory_space<vmem>>, vector<8x1xf32>
      %cst_11 = arith.constant 9.99999974E-6 : f32
      %17 = vector.broadcast %cst_11 : f32 to vector<8x1xf32>
      %18 = arith.addf %15, %17 : vector<8x1xf32>
      %19 = math.rsqrt %18 : vector<8x1xf32>
      %20 = arith.mulf %16, %19 : vector<8x1xf32>
      %c0_12 = arith.constant 0 : index
      %c0_13 = arith.constant 0 : index
      %21 = vector.load %arg5[%c0_12, %c0_13] : memref<8x1xf32, #tpu.memory_space<vmem>>, vector<8x1xf32>
      %22 = arith.mulf %12, %20 : vector<8x1xf32>
      %23 = arith.subf %21, %22 : vector<8x1xf32>
      %24 = arith.index_cast %arg1 : i32 to index
      %c0_14 = arith.constant 0 : index
      %c0_15 = arith.constant 0 : index
      %25 = vector.load %arg8[%24, %c0_14, %c0_15] : memref<2x8x384xf32, #tpu.memory_space<vmem>>, vector<1x8x384xf32>
      %26 = vector.shape_cast %25 : vector<1x8x384xf32> to vector<8x384xf32>
      %27 = vector.broadcast %20 : vector<8x1xf32> to vector<8x384xf32>
      %28 = arith.mulf %26, %27 : vector<8x384xf32>
      %29 = vector.broadcast %23 : vector<8x1xf32> to vector<8x384xf32>
      %30 = arith.addf %28, %29 : vector<8x384xf32>
      %cst_16 = arith.constant 0.000000e+00 : f32
      %31 = vector.broadcast %cst_16 : f32 to vector<8x384xf32>
      %32 = arith.maximumf %30, %31 : vector<8x384xf32>
      %33 = arith.truncf %32 : vector<8x384xf32> to vector<8x384xbf16>
      %c0_17 = arith.constant 0 : index
      %c0_18 = arith.constant 0 : index
      %c0_19 = arith.constant 0 : index
      %34 = vector.load %arg7[%c0_17, %c0_18, %c0_19] : memref<1x8x384xbf16, #tpu.memory_space<vmem>>, vector<1x8x384xbf16>
      %35 = vector.shape_cast %34 : vector<1x8x384xbf16> to vector<8x384xbf16>
      %36 = vector.shape_cast %33 : vector<8x384xbf16> to vector<1x8x384xbf16>
      tpu.vector_store %arg7[%c0_17, %c0_18, %c0_19], %36 {strides = array<i32>} : memref<1x8x384xbf16, #tpu.memory_space<vmem>>, vector<1x8x384xbf16>,
    } else {
    }
    return
  }
  func.func @transform_0(%arg0: i32, %arg1: i32) -> (i32, i32, i32) {
    %c0_i32 = arith.constant 0 : i32
    %0 = arith.cmpi eq, %arg0, %c0_i32 : i32
    %c0_i32_0 = arith.constant 0 : i32
    %1 = arith.select %0, %arg1, %c0_i32_0 : i32
    %c0_i32_1 = arith.constant 0 : i32
    %c0_i32_2 = arith.constant 0 : i32
    %c0_i32_3 = arith.constant 0 : i32
    return %1, %c0_i32_1, %c0_i32_2 : i32, i32, i32
  }
  func.func @transform_1(%arg0: i32, %arg1: i32) -> (i32, i32) {
    %c0_i32 = arith.constant 0 : i32
    %c0_i32_0 = arith.constant 0 : i32
    %c0_i32_1 = arith.constant 0 : i32
    return %c0_i32, %c0_i32_0 : i32, i32
  }
  func.func @transform_2(%arg0: i32, %arg1: i32) -> (i32, i32) {
    %c0_i32 = arith.constant 0 : i32
    %c0_i32_0 = arith.constant 0 : i32
    %c0_i32_1 = arith.constant 0 : i32
    return %c0_i32, %c0_i32_0 : i32, i32
  }
  func.func @transform_3(%arg0: i32, %arg1: i32) -> (i32, i32) {
    %c0_i32 = arith.constant 0 : i32
    %c0_i32_0 = arith.constant 0 : i32
    %c0_i32_1 = arith.constant 0 : i32
    return %c0_i32, %c0_i32_0 : i32, i32
  }
  func.func @transform_4(%arg0: i32, %arg1: i32) -> (i32, i32) {
    %c0_i32 = arith.constant 0 : i32
    %c0_i32_0 = arith.constant 0 : i32
    %c0_i32_1 = arith.constant 0 : i32
    return %c0_i32, %c0_i32_0 : i32, i32
  }
  func.func @transform_5(%arg0: i32, %arg1: i32) -> (i32, i32, i32) {
    %c2_i32 = arith.constant 2 : i32
    %0 = arith.cmpi eq, %arg0, %c2_i32 : i32
    %c0_i32 = arith.constant 0 : i32
    %1 = arith.select %0, %arg1, %c0_i32 : i32
    %c0_i32_0 = arith.constant 0 : i32
    %c0_i32_1 = arith.constant 0 : i32
    %c0_i32_2 = arith.constant 0 : i32
    return %1, %c0_i32_0, %c0_i32_1 : i32, i32, i32
  }
}

module attributes {stable_mosaic.version = 11 : i64} {
  func.func @kernel(%arg0: i32, %arg1: i32, %arg2: memref<1x8x512xbf16, #tpu.memory_space<vmem>>, %arg3: memref<4x128xbf16, #tpu.memory_space<vmem>>, %arg4: memref<4x1xf32, #tpu.memory_space<vmem>>, %arg5: memref<4x1xf32, #tpu.memory_space<vmem>>, %arg6: memref<1x384xf32, #tpu.memory_space<vmem>>, %arg7: memref<1x4x384xf32, #tpu.memory_space<vmem>>, %arg8: memref<2x4x384xf32, #tpu.memory_space<vmem>>, %arg9: memref<128x384xbf16, #tpu.memory_space<vmem>>, %arg10: memref<4x1xf32, #tpu.memory_space<vmem>>, %arg11: memref<4x1xf32, #tpu.memory_space<vmem>>) attributes {dimension_semantics = [#tpu.dimension_semantics<arbitrary>, #tpu.dimension_semantics<arbitrary>], iteration_bounds = array<i64: 3, 2>, scalar_prefetch = 0 : i64, scratch_operands = 4 : i64, tpu.core_type = #tpu.core_type<tc>, window_params = [{transform_indices = @transform_0, window_bounds = array<i64: 1, 8, 512>}, {pipeline_mode = #tpu.pipeline_mode<synchronous>, transform_indices = @transform_1, window_bounds = array<i64: 4, 128>}, {pipeline_mode = #tpu.pipeline_mode<synchronous>, transform_indices = @transform_2, window_bounds = array<i64: 4, 1>}, {pipeline_mode = #tpu.pipeline_mode<synchronous>, transform_indices = @transform_3, window_bounds = array<i64: 4, 1>}, {pipeline_mode = #tpu.pipeline_mode<synchronous>, transform_indices = @transform_4, window_bounds = array<i64: 1, 384>}, {transform_indices = @transform_5, window_bounds = array<i64: 1, 4, 384>}]} {
    %c0 = arith.constant 0 : index
    %c0_0 = arith.constant 0 : index
    %0 = vector.load %arg6[%c0, %c0_0] : memref<1x384xf32, #tpu.memory_space<vmem>>, vector<1x384xf32>
    %c0_i32 = arith.constant 0 : i32
    %1 = arith.cmpi eq, %arg0, %c0_i32 : i32
    %2 = arith.extui %1 : i1 to i32
    %c0_i32_1 = arith.constant 0 : i32
    %3 = arith.cmpi ne, %2, %c0_i32_1 : i32
    scf.if %3 {
      %c0_4 = arith.constant 0 : index
      %c0_5 = arith.constant 0 : index
      %c0_6 = arith.constant 0 : index
      %10 = vector.load %arg2[%c0_4, %c0_5, %c0_6] : memref<1x8x512xbf16, #tpu.memory_space<vmem>>, vector<1x8x512xbf16>
      %11 = vector.shape_cast %10 : vector<1x8x512xbf16> to vector<8x512xbf16>
      %12 = vector.extract_strided_slice %11 {offsets = [0, 0], sizes = [8, 384], strides = [1, 1]} : vector<8x512xbf16> to vector<8x384xbf16>
      %c0_7 = arith.constant 0 : index
      %c0_8 = arith.constant 0 : index
      %13 = vector.load %arg9[%c0_7, %c0_8] : memref<128x384xbf16, #tpu.memory_space<vmem>>, vector<8x384xbf16>
      tpu.vector_store %arg9[%c0_7, %c0_8], %12 {strides = array<i32>} : memref<128x384xbf16, #tpu.memory_space<vmem>>, vector<8x384xbf16>,
      %14 = vector.extract_strided_slice %11 {offsets = [0, 1], sizes = [8, 384], strides = [1, 1]} : vector<8x512xbf16> to vector<8x384xbf16>
      %c8 = arith.constant 8 : index
      %c0_9 = arith.constant 0 : index
      %15 = vector.load %arg9[%c8, %c0_9] : memref<128x384xbf16, #tpu.memory_space<vmem>>, vector<8x384xbf16>
      tpu.vector_store %arg9[%c8, %c0_9], %14 {strides = array<i32>} : memref<128x384xbf16, #tpu.memory_space<vmem>>, vector<8x384xbf16>,
      %16 = vector.extract_strided_slice %11 {offsets = [0, 2], sizes = [8, 384], strides = [1, 1]} : vector<8x512xbf16> to vector<8x384xbf16>
      %c16 = arith.constant 16 : index
      %c0_10 = arith.constant 0 : index
      %17 = vector.load %arg9[%c16, %c0_10] : memref<128x384xbf16, #tpu.memory_space<vmem>>, vector<8x384xbf16>
      tpu.vector_store %arg9[%c16, %c0_10], %16 {strides = array<i32>} : memref<128x384xbf16, #tpu.memory_space<vmem>>, vector<8x384xbf16>,
      %18 = vector.extract_strided_slice %11 {offsets = [0, 3], sizes = [8, 384], strides = [1, 1]} : vector<8x512xbf16> to vector<8x384xbf16>
      %c24 = arith.constant 24 : index
      %c0_11 = arith.constant 0 : index
      %19 = vector.load %arg9[%c24, %c0_11] : memref<128x384xbf16, #tpu.memory_space<vmem>>, vector<8x384xbf16>
      tpu.vector_store %arg9[%c24, %c0_11], %18 {strides = array<i32>} : memref<128x384xbf16, #tpu.memory_space<vmem>>, vector<8x384xbf16>,
      %20 = vector.extract_strided_slice %11 {offsets = [0, 21], sizes = [8, 384], strides = [1, 1]} : vector<8x512xbf16> to vector<8x384xbf16>
      %c32 = arith.constant 32 : index
      %c0_12 = arith.constant 0 : index
      %21 = vector.load %arg9[%c32, %c0_12] : memref<128x384xbf16, #tpu.memory_space<vmem>>, vector<8x384xbf16>
      tpu.vector_store %arg9[%c32, %c0_12], %20 {strides = array<i32>} : memref<128x384xbf16, #tpu.memory_space<vmem>>, vector<8x384xbf16>,
      %22 = vector.extract_strided_slice %11 {offsets = [0, 22], sizes = [8, 384], strides = [1, 1]} : vector<8x512xbf16> to vector<8x384xbf16>
      %c40 = arith.constant 40 : index
      %c0_13 = arith.constant 0 : index
      %23 = vector.load %arg9[%c40, %c0_13] : memref<128x384xbf16, #tpu.memory_space<vmem>>, vector<8x384xbf16>
      tpu.vector_store %arg9[%c40, %c0_13], %22 {strides = array<i32>} : memref<128x384xbf16, #tpu.memory_space<vmem>>, vector<8x384xbf16>,
      %24 = vector.extract_strided_slice %11 {offsets = [0, 23], sizes = [8, 384], strides = [1, 1]} : vector<8x512xbf16> to vector<8x384xbf16>
      %c48 = arith.constant 48 : index
      %c0_14 = arith.constant 0 : index
      %25 = vector.load %arg9[%c48, %c0_14] : memref<128x384xbf16, #tpu.memory_space<vmem>>, vector<8x384xbf16>
      tpu.vector_store %arg9[%c48, %c0_14], %24 {strides = array<i32>} : memref<128x384xbf16, #tpu.memory_space<vmem>>, vector<8x384xbf16>,
      %26 = vector.extract_strided_slice %11 {offsets = [0, 24], sizes = [8, 384], strides = [1, 1]} : vector<8x512xbf16> to vector<8x384xbf16>
      %c56 = arith.constant 56 : index
      %c0_15 = arith.constant 0 : index
      %27 = vector.load %arg9[%c56, %c0_15] : memref<128x384xbf16, #tpu.memory_space<vmem>>, vector<8x384xbf16>
      tpu.vector_store %arg9[%c56, %c0_15], %26 {strides = array<i32>} : memref<128x384xbf16, #tpu.memory_space<vmem>>, vector<8x384xbf16>,
      %28 = vector.extract_strided_slice %11 {offsets = [0, 42], sizes = [8, 384], strides = [1, 1]} : vector<8x512xbf16> to vector<8x384xbf16>
      %c64 = arith.constant 64 : index
      %c0_16 = arith.constant 0 : index
      %29 = vector.load %arg9[%c64, %c0_16] : memref<128x384xbf16, #tpu.memory_space<vmem>>, vector<8x384xbf16>
      tpu.vector_store %arg9[%c64, %c0_16], %28 {strides = array<i32>} : memref<128x384xbf16, #tpu.memory_space<vmem>>, vector<8x384xbf16>,
      %30 = vector.extract_strided_slice %11 {offsets = [0, 43], sizes = [8, 384], strides = [1, 1]} : vector<8x512xbf16> to vector<8x384xbf16>
      %c72 = arith.constant 72 : index
      %c0_17 = arith.constant 0 : index
      %31 = vector.load %arg9[%c72, %c0_17] : memref<128x384xbf16, #tpu.memory_space<vmem>>, vector<8x384xbf16>
      tpu.vector_store %arg9[%c72, %c0_17], %30 {strides = array<i32>} : memref<128x384xbf16, #tpu.memory_space<vmem>>, vector<8x384xbf16>,
      %32 = vector.extract_strided_slice %11 {offsets = [0, 44], sizes = [8, 384], strides = [1, 1]} : vector<8x512xbf16> to vector<8x384xbf16>
      %c80 = arith.constant 80 : index
      %c0_18 = arith.constant 0 : index
      %33 = vector.load %arg9[%c80, %c0_18] : memref<128x384xbf16, #tpu.memory_space<vmem>>, vector<8x384xbf16>
      tpu.vector_store %arg9[%c80, %c0_18], %32 {strides = array<i32>} : memref<128x384xbf16, #tpu.memory_space<vmem>>, vector<8x384xbf16>,
      %34 = vector.extract_strided_slice %11 {offsets = [0, 45], sizes = [8, 384], strides = [1, 1]} : vector<8x512xbf16> to vector<8x384xbf16>
      %c88 = arith.constant 88 : index
      %c0_19 = arith.constant 0 : index
      %35 = vector.load %arg9[%c88, %c0_19] : memref<128x384xbf16, #tpu.memory_space<vmem>>, vector<8x384xbf16>
      tpu.vector_store %arg9[%c88, %c0_19], %34 {strides = array<i32>} : memref<128x384xbf16, #tpu.memory_space<vmem>>, vector<8x384xbf16>,
      %36 = vector.extract_strided_slice %11 {offsets = [0, 63], sizes = [8, 384], strides = [1, 1]} : vector<8x512xbf16> to vector<8x384xbf16>
      %c96 = arith.constant 96 : index
      %c0_20 = arith.constant 0 : index
      %37 = vector.load %arg9[%c96, %c0_20] : memref<128x384xbf16, #tpu.memory_space<vmem>>, vector<8x384xbf16>
      tpu.vector_store %arg9[%c96, %c0_20], %36 {strides = array<i32>} : memref<128x384xbf16, #tpu.memory_space<vmem>>, vector<8x384xbf16>,
      %38 = vector.extract_strided_slice %11 {offsets = [0, 64], sizes = [8, 384], strides = [1, 1]} : vector<8x512xbf16> to vector<8x384xbf16>
      %c104 = arith.constant 104 : index
      %c0_21 = arith.constant 0 : index
      %39 = vector.load %arg9[%c104, %c0_21] : memref<128x384xbf16, #tpu.memory_space<vmem>>, vector<8x384xbf16>
      tpu.vector_store %arg9[%c104, %c0_21], %38 {strides = array<i32>} : memref<128x384xbf16, #tpu.memory_space<vmem>>, vector<8x384xbf16>,
      %40 = vector.extract_strided_slice %11 {offsets = [0, 65], sizes = [8, 384], strides = [1, 1]} : vector<8x512xbf16> to vector<8x384xbf16>
      %c112 = arith.constant 112 : index
      %c0_22 = arith.constant 0 : index
      %41 = vector.load %arg9[%c112, %c0_22] : memref<128x384xbf16, #tpu.memory_space<vmem>>, vector<8x384xbf16>
      tpu.vector_store %arg9[%c112, %c0_22], %40 {strides = array<i32>} : memref<128x384xbf16, #tpu.memory_space<vmem>>, vector<8x384xbf16>,
      %42 = vector.extract_strided_slice %11 {offsets = [0, 66], sizes = [8, 384], strides = [1, 1]} : vector<8x512xbf16> to vector<8x384xbf16>
      %c120 = arith.constant 120 : index
      %c0_23 = arith.constant 0 : index
      %43 = vector.load %arg9[%c120, %c0_23] : memref<128x384xbf16, #tpu.memory_space<vmem>>, vector<8x384xbf16>
      tpu.vector_store %arg9[%c120, %c0_23], %42 {strides = array<i32>} : memref<128x384xbf16, #tpu.memory_space<vmem>>, vector<8x384xbf16>,
      %c0_24 = arith.constant 0 : index
      %c0_25 = arith.constant 0 : index
      %44 = vector.load %arg3[%c0_24, %c0_25] : memref<4x128xbf16, #tpu.memory_space<vmem>>, vector<4x128xbf16>
      %c0_26 = arith.constant 0 : index
      %c0_27 = arith.constant 0 : index
      %45 = vector.load %arg9[%c0_26, %c0_27] : memref<128x384xbf16, #tpu.memory_space<vmem>>, vector<128x384xbf16>
      %cst = arith.constant dense<0.000000e+00> : vector<4x384xf32>
      %46 = tpu.matmul %44, %45, %cst {dimension_numbers = #tpu.dot_dimension_numbers<[1], [0], [0], [1], [0, 0, 1, 1], [], []>} : vector<4x128xbf16>, vector<128x384xbf16>, vector<4x384xf32> -> vector<4x384xf32>
      %47 = arith.index_cast %arg1 : i32 to index
      %c0_28 = arith.constant 0 : index
      %c0_29 = arith.constant 0 : index
      %48 = vector.load %arg8[%47, %c0_28, %c0_29] : memref<2x4x384xf32, #tpu.memory_space<vmem>>, vector<1x4x384xf32>
      %49 = vector.shape_cast %48 : vector<1x4x384xf32> to vector<4x384xf32>
      %50 = vector.shape_cast %46 : vector<4x384xf32> to vector<1x4x384xf32>
      tpu.vector_store %arg8[%47, %c0_28, %c0_29], %50 {strides = array<i32>} : memref<2x4x384xf32, #tpu.memory_space<vmem>>, vector<1x4x384xf32>,
      %c0_i32_30 = arith.constant 0 : i32
      %51 = arith.cmpi eq, %arg1, %c0_i32_30 : i32
      %52 = arith.extui %51 : i1 to i32
      %c0_i32_31 = arith.constant 0 : i32
      %53 = arith.cmpi ne, %52, %c0_i32_31 : i32
      scf.if %53 {
        %cst_37 = arith.constant 0.000000e+00 : f32
        %61 = vector.broadcast %cst_37 : f32 to vector<4x1xf32>
        %c0_38 = arith.constant 0 : index
        %c0_39 = arith.constant 0 : index
        %62 = vector.load %arg10[%c0_38, %c0_39] : memref<4x1xf32, #tpu.memory_space<vmem>>, vector<4x1xf32>
        tpu.vector_store %arg10[%c0_38, %c0_39], %61 {strides = array<i32>} : memref<4x1xf32, #tpu.memory_space<vmem>>, vector<4x1xf32>,
      } else {
      }
      %c0_32 = arith.constant 0 : index
      %c0_33 = arith.constant 0 : index
      %54 = vector.load %arg10[%c0_32, %c0_33] : memref<4x1xf32, #tpu.memory_space<vmem>>, vector<4x1xf32>
      %55 = vector.broadcast %0 : vector<1x384xf32> to vector<4x384xf32>
      %56 = arith.mulf %46, %55 : vector<4x384xf32>
      %cst_34 = arith.constant dense<0.000000e+00> : vector<4xf32>
      %57 = vector.multi_reduction <add>, %56, %cst_34 [1] : vector<4x384xf32> to vector<4xf32>
      %58 = vector.shape_cast %57 : vector<4xf32> to vector<4x1xf32>
      %59 = arith.addf %54, %58 : vector<4x1xf32>
      %c0_35 = arith.constant 0 : index
      %c0_36 = arith.constant 0 : index
      %60 = vector.load %arg10[%c0_35, %c0_36] : memref<4x1xf32, #tpu.memory_space<vmem>>, vector<4x1xf32>
      tpu.vector_store %arg10[%c0_35, %c0_36], %59 {strides = array<i32>} : memref<4x1xf32, #tpu.memory_space<vmem>>, vector<4x1xf32>,
    } else {
    }
    %c1_i32 = arith.constant 1 : i32
    %4 = arith.cmpi eq, %arg0, %c1_i32 : i32
    %5 = arith.extui %4 : i1 to i32
    %c0_i32_2 = arith.constant 0 : i32
    %6 = arith.cmpi ne, %5, %c0_i32_2 : i32
    scf.if %6 {
      %c0_4 = arith.constant 0 : index
      %c0_5 = arith.constant 0 : index
      %10 = vector.load %arg10[%c0_4, %c0_5] : memref<4x1xf32, #tpu.memory_space<vmem>>, vector<4x1xf32>
      %cst = arith.constant 0.00154320989 : f32
      %11 = vector.broadcast %cst : f32 to vector<4x1xf32>
      %12 = arith.mulf %10, %11 : vector<4x1xf32>
      %13 = arith.index_cast %arg1 : i32 to index
      %c0_6 = arith.constant 0 : index
      %c0_7 = arith.constant 0 : index
      %14 = vector.load %arg8[%13, %c0_6, %c0_7] : memref<2x4x384xf32, #tpu.memory_space<vmem>>, vector<1x4x384xf32>
      %15 = vector.shape_cast %14 : vector<1x4x384xf32> to vector<4x384xf32>
      %16 = vector.broadcast %12 : vector<4x1xf32> to vector<4x384xf32>
      %17 = arith.subf %15, %16 : vector<4x384xf32>
      %18 = vector.broadcast %0 : vector<1x384xf32> to vector<4x384xf32>
      %19 = arith.mulf %17, %18 : vector<4x384xf32>
      %c0_i32_8 = arith.constant 0 : i32
      %20 = arith.cmpi eq, %arg1, %c0_i32_8 : i32
      %21 = arith.extui %20 : i1 to i32
      %c0_i32_9 = arith.constant 0 : i32
      %22 = arith.cmpi ne, %21, %c0_i32_9 : i32
      scf.if %22 {
        %cst_15 = arith.constant 0.000000e+00 : f32
        %29 = vector.broadcast %cst_15 : f32 to vector<4x1xf32>
        %c0_16 = arith.constant 0 : index
        %c0_17 = arith.constant 0 : index
        %30 = vector.load %arg11[%c0_16, %c0_17] : memref<4x1xf32, #tpu.memory_space<vmem>>, vector<4x1xf32>
        tpu.vector_store %arg11[%c0_16, %c0_17], %29 {strides = array<i32>} : memref<4x1xf32, #tpu.memory_space<vmem>>, vector<4x1xf32>,
      } else {
      }
      %c0_10 = arith.constant 0 : index
      %c0_11 = arith.constant 0 : index
      %23 = vector.load %arg11[%c0_10, %c0_11] : memref<4x1xf32, #tpu.memory_space<vmem>>, vector<4x1xf32>
      %24 = arith.mulf %19, %19 : vector<4x384xf32>
      %cst_12 = arith.constant dense<0.000000e+00> : vector<4xf32>
      %25 = vector.multi_reduction <add>, %24, %cst_12 [1] : vector<4x384xf32> to vector<4xf32>
      %26 = vector.shape_cast %25 : vector<4xf32> to vector<4x1xf32>
      %27 = arith.addf %23, %26 : vector<4x1xf32>
      %c0_13 = arith.constant 0 : index
      %c0_14 = arith.constant 0 : index
      %28 = vector.load %arg11[%c0_13, %c0_14] : memref<4x1xf32, #tpu.memory_space<vmem>>, vector<4x1xf32>
      tpu.vector_store %arg11[%c0_13, %c0_14], %27 {strides = array<i32>} : memref<4x1xf32, #tpu.memory_space<vmem>>, vector<4x1xf32>,
    } else {
    }
    %c2_i32 = arith.constant 2 : i32
    %7 = arith.cmpi eq, %arg0, %c2_i32 : i32
    %8 = arith.extui %7 : i1 to i32
    %c0_i32_3 = arith.constant 0 : i32
    %9 = arith.cmpi ne, %8, %c0_i32_3 : i32
    scf.if %9 {
      %c0_4 = arith.constant 0 : index
      %c0_5 = arith.constant 0 : index
      %10 = vector.load %arg10[%c0_4, %c0_5] : memref<4x1xf32, #tpu.memory_space<vmem>>, vector<4x1xf32>
      %cst = arith.constant 0.00154320989 : f32
      %11 = vector.broadcast %cst : f32 to vector<4x1xf32>
      %12 = arith.mulf %10, %11 : vector<4x1xf32>
      %c0_6 = arith.constant 0 : index
      %c0_7 = arith.constant 0 : index
      %13 = vector.load %arg11[%c0_6, %c0_7] : memref<4x1xf32, #tpu.memory_space<vmem>>, vector<4x1xf32>
      %cst_8 = arith.constant 0.00154320989 : f32
      %14 = vector.broadcast %cst_8 : f32 to vector<4x1xf32>
      %15 = arith.mulf %13, %14 : vector<4x1xf32>
      %c0_9 = arith.constant 0 : index
      %c0_10 = arith.constant 0 : index
      %16 = vector.load %arg4[%c0_9, %c0_10] : memref<4x1xf32, #tpu.memory_space<vmem>>, vector<4x1xf32>
      %cst_11 = arith.constant 9.99999974E-6 : f32
      %17 = vector.broadcast %cst_11 : f32 to vector<4x1xf32>
      %18 = arith.addf %15, %17 : vector<4x1xf32>
      %19 = math.rsqrt %18 : vector<4x1xf32>
      %20 = arith.mulf %16, %19 : vector<4x1xf32>
      %c0_12 = arith.constant 0 : index
      %c0_13 = arith.constant 0 : index
      %21 = vector.load %arg5[%c0_12, %c0_13] : memref<4x1xf32, #tpu.memory_space<vmem>>, vector<4x1xf32>
      %22 = arith.mulf %12, %20 : vector<4x1xf32>
      %23 = arith.subf %21, %22 : vector<4x1xf32>
      %24 = arith.index_cast %arg1 : i32 to index
      %c0_14 = arith.constant 0 : index
      %c0_15 = arith.constant 0 : index
      %25 = vector.load %arg8[%24, %c0_14, %c0_15] : memref<2x4x384xf32, #tpu.memory_space<vmem>>, vector<1x4x384xf32>
      %26 = vector.shape_cast %25 : vector<1x4x384xf32> to vector<4x384xf32>
      %27 = vector.broadcast %20 : vector<4x1xf32> to vector<4x384xf32>
      %28 = arith.mulf %26, %27 : vector<4x384xf32>
      %29 = vector.broadcast %23 : vector<4x1xf32> to vector<4x384xf32>
      %30 = arith.addf %28, %29 : vector<4x384xf32>
      %cst_16 = arith.constant 0.000000e+00 : f32
      %31 = vector.broadcast %cst_16 : f32 to vector<4x384xf32>
      %32 = arith.maximumf %30, %31 : vector<4x384xf32>
      %c0_17 = arith.constant 0 : index
      %c0_18 = arith.constant 0 : index
      %c0_19 = arith.constant 0 : index
      %33 = vector.load %arg7[%c0_17, %c0_18, %c0_19] : memref<1x4x384xf32, #tpu.memory_space<vmem>>, vector<1x4x384xf32>
      %34 = vector.shape_cast %33 : vector<1x4x384xf32> to vector<4x384xf32>
      %35 = vector.shape_cast %32 : vector<4x384xf32> to vector<1x4x384xf32>
      tpu.vector_store %arg7[%c0_17, %c0_18, %c0_19], %35 {strides = array<i32>} : memref<1x4x384xf32, #tpu.memory_space<vmem>>, vector<1x4x384xf32>,
    } else {
    }
    return
  }
  func.func @transform_0(%arg0: i32, %arg1: i32) -> (i32, i32, i32) {
    %c0_i32 = arith.constant 0 : i32
    %0 = arith.cmpi eq, %arg0, %c0_i32 : i32
    %c0_i32_0 = arith.constant 0 : i32
    %1 = arith.select %0, %arg1, %c0_i32_0 : i32
    %c0_i32_1 = arith.constant 0 : i32
    %c0_i32_2 = arith.constant 0 : i32
    %c0_i32_3 = arith.constant 0 : i32
    return %1, %c0_i32_1, %c0_i32_2 : i32, i32, i32
  }
  func.func @transform_1(%arg0: i32, %arg1: i32) -> (i32, i32) {
    %c0_i32 = arith.constant 0 : i32
    %c0_i32_0 = arith.constant 0 : i32
    %c0_i32_1 = arith.constant 0 : i32
    return %c0_i32, %c0_i32_0 : i32, i32
  }
  func.func @transform_2(%arg0: i32, %arg1: i32) -> (i32, i32) {
    %c0_i32 = arith.constant 0 : i32
    %c0_i32_0 = arith.constant 0 : i32
    %c0_i32_1 = arith.constant 0 : i32
    return %c0_i32, %c0_i32_0 : i32, i32
  }
  func.func @transform_3(%arg0: i32, %arg1: i32) -> (i32, i32) {
    %c0_i32 = arith.constant 0 : i32
    %c0_i32_0 = arith.constant 0 : i32
    %c0_i32_1 = arith.constant 0 : i32
    return %c0_i32, %c0_i32_0 : i32, i32
  }
  func.func @transform_4(%arg0: i32, %arg1: i32) -> (i32, i32) {
    %c0_i32 = arith.constant 0 : i32
    %c0_i32_0 = arith.constant 0 : i32
    %c0_i32_1 = arith.constant 0 : i32
    return %c0_i32, %c0_i32_0 : i32, i32
  }
  func.func @transform_5(%arg0: i32, %arg1: i32) -> (i32, i32, i32) {
    %c2_i32 = arith.constant 2 : i32
    %0 = arith.cmpi eq, %arg0, %c2_i32 : i32
    %c0_i32 = arith.constant 0 : i32
    %1 = arith.select %0, %arg1, %c0_i32 : i32
    %c0_i32_0 = arith.constant 0 : i32
    %c0_i32_1 = arith.constant 0 : i32
    %c0_i32_2 = arith.constant 0 : i32
    return %1, %c0_i32_0, %c0_i32_1 : i32, i32, i32
  }
}

</mosaic_0001>

<bundles_post_ra>
// kernel: up_block_forward.2
= control target key start
LH: loop header
LB: loop body
LE: loop exit
PB: predicated region body
PF: predicated region fallthrough
CT: control target
= control target key end

     0   :  { %s1187_s18 = smov 0   ;;  %s1189_s19 = smov 0   ;;  %s1327_s0 = inlined_call_operand.vmem [shape: bf16[2,8,512], index: 0, kind: input, shape index: {}]   ;;  %s1328_s1 = inlined_call_operand.vmem [shape: bf16[8,128], index: 1, kind: input, shape index: {}]   ;;  %s1329_s2 = inlined_call_operand.vmem [shape: f32[8,1], index: 2, kind: input, shape index: {}]   ;;  %s1330_s3 = inlined_call_operand.vmem [shape: f32[8,1], index: 3, kind: input, shape index: {}]   ;;  %s1331_s4 = inlined_call_operand.vmem [shape: f32[1,384], index: 4, kind: input, shape index: {}]   ;;  %s1332_s5 = inlined_call_operand.vmem [shape: bf16[2,8,384], index: 5, kind: output, shape index: {}]  }
   0x1   :  { %s1191_s20 = smov 0   ;;  %s1193_s21 = smov 0  }
   0x2   :  { %s1195_s22 = smov 0  }
   0x3 LB: > { %s24_s23 = sadd.s32 1, %s1128_s20  ;;  %s27_s24 = sadd.s32 1, %s1132_s21  ;;  %s1136_s22 = sphi %s1195_s22, %s15_s22   ;;  %s1132_s21 = sphi %s1193_s21, %s1336_s21   ;;  %s1128_s20 = sphi %s1191_s20, %s1335_s20   ;;  %s1124_s19 = sphi %s1189_s19, %s1334_s19   ;;  %s1120_s18 = sphi %s1187_s18, %s1333_s18  }
   0x4   : > { %p25_p0 = scmp.ge.s32.totalorder %s24_s23, 2  ;;  %p896_p1 = scmp.ge.s32.totalorder %s1136_s22, 1 }
   0x5   : > { %p211_p2 = scmp.lt.s32.totalorder %s1136_s22, 7 }
   0x6   : > { %s1338_s23 = smov (%p25_p0, %s24_s23), 0  ;;  %s1340_s24 = smov (!%p25_p0, %s27_s24), %s1132_s21 }
   0x7   : > { %p212_p3 = pnand %p896_p1, %p211_p2  ;;  %p29_p4 = scmp.ge.s32.totalorder %s1340_s24, 3 }
   0x8   : > { %p243_p5 = scmp.eq.s32.totalorder (!%p212_p3), %s1124_s19, 0  ;;  %p252_p6 = scmp.eq.s32.totalorder (!%p212_p3), %s1124_s19, 2 }
   0x9   : > { %s1342_s24 = smov (%p29_p4, %s1340_s24), 0  ;;  %215 = sbr.rel (%p212_p3) target bundleno = 914 (0x392), region = 40 }
   0xa   : > { %p900_p9 = scmp.ne.s32.totalorder (!%p212_p3), %s1124_s19, 0 }
   0xe   : > { %v1226_v0 = vld [vmem:[%s1331_s4] sm:$0x7]  ;;  %s244_s27 = scalar_select %p243_p5, %s1120_s18, 0 }
   0xf   : > { %s253_s28 = scalar_select %p252_p6, %s1120_s18, 0 }
  0x10   : > { %p245_p7 = scmp.lt.s32.totalorder %s244_s27, 1  ;;  %s1138_s12 = smov (!%p900_p9), 68  }
  0x11   : > { %p254_p8 = scmp.lt.s32.totalorder %s253_s28, 1  ;;  %s1139_s13 = smov (!%p900_p9), 66  }
  0x12   : > { %s1344_s27 = smov (!%p245_p7, %s244_s27), 1  ;;  %265 = sbr.rel (%p900_p9) target bundleno = 496 (0x1f0), region = 44 }
  0x13   : > { %s1346_s28 = smov (!%p254_p8, %s253_s28), 1  ;;  %s1006_s29 = sshll.u32 %s1344_s27, 4 }
  0x14   : > { %s249_s7 = scalar_lea.vmem %s1327_s0, %s1006_s29  ;;  %s1034_s8 = smul.u32 12, %s1346_s28 }
  0x15   : > { %s1140_s14 = smov (!%p900_p9), 67   ;;  %s1141_s15 = smov (!%p900_p9), 65  }
  0x16   : > { %s1236_s11 = scalar_lea.vmem %s1332_s5, %s1034_s8  ;;  %s1142_s16 = smov (!%p900_p9), 85  }
  0x17   : > { %v267_v1 = vld [vmem:[%s249_s7 + $0x8] sm:$0xff]  ;;  %v266_v2 = vld [vmem:[%s249_s7] sm:$0xff]  ;;  %s1143_s17 = smov 86   ;;  %s1144_s25 = smov 88   ;;  %vm434_vm0 = vcmask 556032   ;;  %vm278_vm1 = vcmask 1043456  }
  0x18   : > { %429 = vrot.lane.b32.xlu1 %v267_v1, %s1138_s12  ;;  %269 = vst [vmem:[#allocation3 + $0x8] sm:$0xf] %v267_v1  ;;  %457 = vrot.lane.b32.xlu0 %v267_v1, %s1139_s13  ;;  %s1145_s26 = smov 87   ;;  %s1146_s27 = smov 106   ;;  %vm462_vm2 = vcmask 539648   ;;  %vm392_vm3 = vcmask 711680  }
  0x19   : > { %455 = vrot.lane.b32.xlu2 %v266_v2, %s1139_s13  ;;  %268 = vst [vmem:[#allocation3] sm:$0xff] %v266_v2  ;;  %s1147_s28 = smov 105   ;;  %s1148_s29 = smov 107   ;;  %vm448_vm4 = vcmask 547840   ;;  %vm476_vm5 = vcmask 531456   ;;  %vm350_vm6 = vcmask 867328  }
  0x1a   : > { %s1149_s30 = smov 108   ;;  %s1150_s6 = smov 126   ;;  %vm420_vm7 = vcmask 695296   ;;  %vm406_vm8 = vcmask 703488   ;;  %vm378_vm9 = vcmask 719872   ;;  %vm308_vm10 = vcmask 1022976  }
  0x1b   : > { %s1151_s7 = smov 125   ;;  %s1152_s8 = smov 127   ;;  %vm364_vm11 = vcmask 859136   ;;  %vm280_vm12 = vcmask 1039360   ;;  %vm336_vm13 = vcmask 875520   ;;  %vm322_vm14 = vcmask 883712  }
  0x1c   : > { %vm294_vm15 = vcmask 1031168   ;;  %p998_p10 = scmp.ne.s32.totalorder %s1120_s18, 0 }
  0x20   : > { %443 = vrot.lane.b32.xlu1 %v267_v1, %s1140_s14  ;;  %471 = vrot.lane.b32.xlu0 %v267_v1, %s1141_s15 }
  0x21   : > { %469 = vrot.lane.b32.xlu2 %v266_v2, %s1141_s15 }
  0x28   : > { %415 = vrot.lane.b32.xlu1 %v267_v1, %s1142_s16  ;;  %401 = vrot.lane.b32.xlu0 %v267_v1, %s1143_s17 }
  0x29   : > { %427 = vrot.lane.b32.xlu2 %v266_v2, %s1138_s12  ;;  %s1031_s12 = smul.u32 24, %s1120_s18 }
  0x2b   : > { %s685_s13 = scalar_lea.vmem [#allocation2], %s1031_s12 }
  0x30   : > { %373 = vrot.lane.b32.xlu1 %v267_v1, %s1144_s25  ;;  %441 = vrot.lane.b32.xlu0 %v266_v2, %s1140_s14 }
  0x31   : > { %387 = vrot.lane.b32.xlu2 %v267_v1, %s1145_s26 }
  0x38   : > { %413 = vrot.lane.b32.xlu1 %v266_v2, %s1142_s16  ;;  %399 = vrot.lane.b32.xlu0 %v266_v2, %s1143_s17 }
  0x39   : > { %345 = vrot.lane.b32.xlu2 %v267_v1, %s1146_s27 }
  0x40   : > { %371 = vrot.lane.b32.xlu1 %v266_v2, %s1144_s25  ;;  %359 = vrot.lane.b32.xlu0 %v267_v1, %s1147_s28 }
  0x41   : > { %385 = vrot.lane.b32.xlu2 %v266_v2, %s1145_s26 }
  0x48   : > { %331 = vrot.lane.b32.xlu1 %v267_v1, %s1148_s29  ;;  %317 = vrot.lane.b32.xlu0 %v267_v1, %s1149_s30 }
  0x49   : > { %343 = vrot.lane.b32.xlu2 %v266_v2, %s1146_s27 }
  0x50   : > { %289 = vrot.lane.b32.xlu1 %v267_v1, %s1150_s6  ;;  %357 = vrot.lane.b32.xlu0 %v266_v2, %s1147_s28 }
  0x51   : > { %303 = vrot.lane.b32.xlu2 %v267_v1, %s1151_s7 }
  0x58   : > { %329 = vrot.lane.b32.xlu1 %v266_v2, %s1148_s29  ;;  %315 = vrot.lane.b32.xlu0 %v266_v2, %s1149_s30 }
  0x59   : > { %274 = vrot.lane.b32.xlu2 %v267_v1, %s1152_s8 }
  0x60   : > { %301 = vrot.lane.b32.xlu1 %v266_v2, %s1151_s7  ;;  %287 = vrot.lane.b32.xlu0 %v266_v2, %s1150_s6 }
  0x61   : > { %272 = vrot.lane.b32.xlu2 %v266_v2, %s1152_s8 }
  0x73   : > { %v456_v3 = vpop.permute.xlu2 %455 }
  0x74   : > { %v459_v6 = vrot.slane %v456_v3, 4 }
  0x7b   : > { %v470_v4 = vpop.permute.xlu2 %469 }
  0x7c   : > { %v473_v21 = vrot.slane %v470_v4, 4 }
  0x83   : > { %v428_v5 = vpop.permute.xlu2 %427 }
  0x84   : > { %v431_v7 = vrot.slane %v428_v5, 4 }
  0x8a   : > { %v430_v8 = vpop.permute.xlu1 %429  ;;  %v458_v9 = vpop.permute.xlu0 %457 }
  0x8b   : > { %v432_v10 = vrot.slane %v430_v8, 4  ;;  %v460_v11 = vrot.slane %v458_v9, 4  ;;  %v388_v12 = vpop.permute.xlu2 %387 }
  0x8c   : > { %v390_v13 = vrot.slane %v388_v12, 4 }
  0x8d   : > { %v436_v14 = vsel %vm434_vm0, %v430_v8, %v432_v10  ;;  %v461_v15 = vsel %vm278_vm1, %v459_v6, %v460_v11  ;;  %v464_v16 = vsel %vm462_vm2, %v458_v9, %v460_v11  ;;  %v433_v17 = vsel %vm278_vm1, %v431_v7, %v432_v10 }
  0x8e   : > { %440 = vst [vmem:[#allocation3 + $0x98] sm:$0xf] %v436_v14  ;;  %v463_v18 = vsel %vm462_vm2, %v456_v3, %v461_v15  ;;  %v435_v19 = vsel %vm434_vm0, %v428_v5, %v433_v17  ;;  %v394_v20 = vsel %vm392_vm3, %v388_v12, %v390_v13 }
  0x8f   : > { %467 = vst [vmem:[#allocation3 + $0xa8] sm:$0xff] %v463_v18 }
  0x90   : > { %468 = vst [vmem:[#allocation3 + $0xb0] sm:$0xf] %v464_v16 }
  0x91   : > { %439 = vst [vmem:[#allocation3 + $0x90] sm:$0xff] %v435_v19 }
  0x92   : > { %v444_v22 = vpop.permute.xlu1 %443  ;;  %v472_v23 = vpop.permute.xlu0 %471  ;;  %398 = vst [vmem:[#allocation3 + $0x74] sm:$0xf] %v394_v20 }
  0x93   : > { %v446_v24 = vrot.slane %v444_v22, 4  ;;  %v474_v25 = vrot.slane %v472_v23, 4  ;;  %v346_v26 = vpop.permute.xlu2 %345 }
  0x94   : > { %v348_v27 = vrot.slane %v346_v26, 4 }
  0x95   : > { %v450_v28 = vsel %vm448_vm4, %v444_v22, %v446_v24  ;;  %v475_v29 = vsel %vm278_vm1, %v473_v21, %v474_v25  ;;  %v478_v30 = vsel %vm476_vm5, %v472_v23, %v474_v25  ;;  %v983_v57 = vld [vmem:[#allocation3 + $0x98] sm:$0xf] }
  0x96   : > { %454 = vst [vmem:[#allocation3 + $0xa4] sm:$0xf] %v450_v28  ;;  %v477_v31 = vsel %vm476_vm5, %v470_v4, %v475_v29  ;;  %v352_v32 = vsel %vm350_vm6, %v346_v26, %v348_v27  ;;  %v987_v41 = vld [vmem:[#allocation3 + $0xa8] sm:$0xf]  ;;  %v1028_v42 = vld [vmem:[#allocation3 + $0xac] sm:$0xf] }
  0x97   : > { %481 = vst [vmem:[#allocation3 + $0xb4] sm:$0xff] %v477_v31  ;;  %v995_v46 = vld [vmem:[#allocation3 + $0xb0] sm:$0xf] }
  0x98   : > { %482 = vst [vmem:[#allocation3 + $0xbc] sm:$0xf] %v478_v30  ;;  %v975_v16 = vld [vmem:[#allocation3 + $0x90] sm:$0xf]  ;;  %v1025_v21 = vld [vmem:[#allocation3 + $0x94] sm:$0xf] }
  0x99   : > { %356 = vst [vmem:[#allocation3 + $0x50] sm:$0xf] %v352_v32  ;;  %v1021_v10 = vld [vmem:[#allocation3 + $0x70] sm:$0xf0] }
  0x9a   : > { %v416_v33 = vpop.permute.xlu1 %415  ;;  %v402_v34 = vpop.permute.xlu0 %401 }
  0x9b   : > { %v418_v35 = vrot.slane %v416_v33, 4  ;;  %v404_v36 = vrot.slane %v402_v34, 4  ;;  %v386_v37 = vpop.permute.xlu2 %385 }
  0x9c   : > { %v389_v38 = vrot.slane %v386_v37, 4 }
  0x9d   : > { %v422_v39 = vsel %vm420_vm7, %v416_v33, %v418_v35  ;;  %v408_v40 = vsel %vm406_vm8, %v402_v34, %v404_v36  ;;  %v1027_v52 = vld [vmem:[#allocation3 + $0xa0] sm:$0xf0] }
  0x9e   : > { %426 = vst [vmem:[#allocation3 + $0x8c] sm:$0xf] %v422_v39  ;;  %v1029_v43 = vld [vmem:[#allocation3 + $0xb0] sm:$0xf0]  ;;  %v989_v44 = vld [vmem:[#allocation3 + $0xb4] sm:$0xf0]  ;;  %v391_v45 = vsel %vm278_vm1, %v389_v38, %v390_v13  ;;  %v984_v59 = vor.u32 %v1027_v52, %v983_v57 }
  0x9f   : > { %412 = vst [vmem:[#allocation3 + $0x80] sm:$0xf] %v408_v40  ;;  %v1030_v47 = vld [vmem:[#allocation3 + $0xb8] sm:$0xf0]  ;;  %v988_v48 = vor.u32 %v1029_v43, %v987_v41  ;;  %v992_v49 = vor.u32 %v1028_v42, %v989_v44  ;;  %v393_v50 = vsel %vm392_vm3, %v386_v37, %v391_v45 }
  0xa0   : > { %v996_v51 = vor.u32 %v1030_v47, %v995_v46  ;;  %397 = vst [vmem:[#allocation3 + $0x6c] sm:$0xff] %v393_v50  ;;  %v947_v47 = vld [vmem:[#allocation3 + $0x50] sm:$0xf] }
  0xa1   : > { %644 = vmatpush.bf16.msra.mxu0 %v988_v48  ;;  %657 = vmatpush.bf16.msra.mxu1 %v992_v49 }
  0xa2   : > { %670 = vmatpush.bf16.msra.mxu2 %v996_v51  ;;  %v374_v53 = vpop.permute.xlu1 %373  ;;  %v442_v54 = vpop.permute.xlu0 %441 }
  0xa3   : > { %v376_v55 = vrot.slane %v374_v53, 4  ;;  %v445_v56 = vrot.slane %v442_v54, 4  ;;  %v344_v58 = vpop.permute.xlu2 %343 }
  0xa4   : > { %v347_v60 = vrot.slane %v344_v58, 4 }
  0xa5   : > { %v380_v61 = vsel %vm378_vm9, %v374_v53, %v376_v55  ;;  %v447_v62 = vsel %vm278_vm1, %v445_v56, %v446_v24  ;;  %v1024_v63 = vld [vmem:[#allocation3 + $0x88] sm:$0xf0] }
  0xa6   : > { %384 = vst [vmem:[#allocation3 + $0x68] sm:$0xf] %v380_v61  ;;  %v449_v1 = vsel %vm448_vm4, %v442_v54, %v447_v62  ;;  %671 = vmatpush.bf16.msra.mxu2 %v984_v59  ;;  %v971_v2 = vld [vmem:[#allocation3 + $0x80] sm:$0xf]  ;;  %v349_v3 = vsel %vm278_vm1, %v347_v60, %v348_v27 }
  0xa7   : > { %453 = vst [vmem:[#allocation3 + $0x9c] sm:$0xff] %v449_v1  ;;  %v972_v4 = vor.u32 %v1024_v63, %v971_v2  ;;  %v351_v5 = vsel %vm350_vm6, %v344_v58, %v349_v3  ;;  %v1020_v52 = vld [vmem:[#allocation3 + $0x68] sm:$0xf0]  ;;  %v953_v53 = vld [vmem:[#allocation3 + $0x6c] sm:$0xf0] }
  0xa8   : > { %355 = vst [vmem:[#allocation3 + $0x48] sm:$0xff] %v351_v5 }
  0xaa   : > { %672 = vmatpush.bf16.msra.mxu2 %v972_v4  ;;  %v414_v6 = vpop.permute.xlu1 %413  ;;  %v400_v7 = vpop.permute.xlu0 %399 }
  0xab   : > { %v417_v8 = vrot.slane %v414_v6, 4  ;;  %v403_v9 = vrot.slane %v400_v7, 4  ;;  %v1256_v11 = vpop.permute.xlu2 %303 }
  0xac   : > { %v306_v12 = vrot.slane %v1256_v11, 4 }
  0xad   : > { %v419_v13 = vsel %vm278_vm1, %v417_v8, %v418_v35  ;;  %v405_v14 = vsel %vm278_vm1, %v403_v9, %v404_v36  ;;  %v959_v15 = vld [vmem:[#allocation3 + $0x68] sm:$0xf] }
  0xae   : > { %v421_v17 = vsel %vm420_vm7, %v414_v6, %v419_v13  ;;  %v407_v18 = vsel %vm406_vm8, %v400_v7, %v405_v14  ;;  %v960_v19 = vor.u32 %v1021_v10, %v959_v15  ;;  %v1026_v20 = vld [vmem:[#allocation3 + $0x98] sm:$0xf0]  ;;  %v977_v22 = vld [vmem:[#allocation3 + $0x9c] sm:$0xf0]  ;;  %v310_v23 = vsel %vm308_vm10, %v1256_v11, %v306_v12 }
  0xaf   : > { %425 = vst [vmem:[#allocation3 + $0x84] sm:$0xff] %v421_v17  ;;  %v976_v24 = vor.u32 %v1026_v20, %v975_v16  ;;  %v980_v25 = vor.u32 %v1025_v21, %v977_v22  ;;  %v939_v15 = vld [vmem:[#allocation3 + $0x48] sm:$0xf] }
  0xb0   : > { %411 = vst [vmem:[#allocation3 + $0x78] sm:$0xff] %v407_v18  ;;  %673 = vmatpush.bf16.msra.mxu2 %v960_v19  ;;  %v911_v19 = vld [vmem:[#allocation3 + $0x8] sm:$0xf] }
  0xb1   : > { %645 = vmatpush.bf16.msra.mxu0 %v976_v24  ;;  %658 = vmatpush.bf16.msra.mxu1 %v980_v25  ;;  %314 = vst [vmem:[#allocation3 + $0x2c] sm:$0xf] %v310_v23  ;;  %v1016_v25 = vld [vmem:[#allocation3 + $0x4c] sm:$0xf] }
  0xb2   : > { %v372_v26 = vpop.permute.xlu1 %371  ;;  %v360_v27 = vpop.permute.xlu0 %359 }
  0xb3   : > { %v375_v28 = vrot.slane %v372_v26, 4  ;;  %v362_v29 = vrot.slane %v360_v27, 4  ;;  %v275_v30 = vpop.permute.xlu2 %274 }
  0xb4   : > { %v277_v31 = vrot.slane %v275_v30, 4 }
  0xb5   : > { %v377_v32 = vsel %vm278_vm1, %v375_v28, %v376_v55  ;;  %v366_v33 = vsel %vm364_vm11, %v360_v27, %v362_v29 }
  0xb6   : > { %v379_v34 = vsel %vm378_vm9, %v372_v26, %v377_v32  ;;  %370 = vst [vmem:[#allocation3 + $0x5c] sm:$0xf] %v366_v33  ;;  %v1023_v35 = vld [vmem:[#allocation3 + $0x80] sm:$0xf0]  ;;  %v965_v36 = vld [vmem:[#allocation3 + $0x84] sm:$0xf0]  ;;  %v282_v37 = vsel %vm280_vm12, %v275_v30, %v277_v31 }
  0xb7   : > { %383 = vst [vmem:[#allocation3 + $0x60] sm:$0xff] %v379_v34  ;;  %v963_v38 = vld [vmem:[#allocation3 + $0x78] sm:$0xf]  ;;  %v1022_v39 = vld [vmem:[#allocation3 + $0x7c] sm:$0xf] }
  0xb8   : > { %v964_v40 = vor.u32 %v1023_v35, %v963_v38  ;;  %v968_v41 = vor.u32 %v1022_v39, %v965_v36  ;;  %286 = vst [vmem:[#allocation3 + $0x14] sm:$0xf] %v282_v37  ;;  %v1012_v14 = vld [vmem:[#allocation3 + $0x28] sm:$0xf0]  ;;  %v483_v34 = vld [vmem:[%s1328_s1] sm:$0xf] }
  0xba   : > { %646 = vmatpush.bf16.msra.mxu0 %v964_v40  ;;  %659 = vmatpush.bf16.msra.mxu1 %v968_v41  ;;  %v332_v42 = vpop.permute.xlu1 %331  ;;  %v318_v43 = vpop.permute.xlu0 %317 }
  0xbb   : > { %v334_v44 = vrot.slane %v332_v42, 4  ;;  %v320_v45 = vrot.slane %v318_v43, 4  ;;  %v273_v46 = vpop.permute.xlu2 %272 }
  0xbc   : > { %v276_v48 = vrot.slane %v273_v46, 4 }
  0xbd   : > { %v338_v49 = vsel %vm336_vm13, %v332_v42, %v334_v44  ;;  %v324_v50 = vsel %vm322_vm14, %v318_v43, %v320_v45  ;;  %v1018_v51 = vld [vmem:[#allocation3 + $0x58] sm:$0xf0] }
  0xbe   : > { %342 = vst [vmem:[#allocation3 + $0x44] sm:$0xf] %v338_v49  ;;  %v948_v54 = vor.u32 %v1018_v51, %v947_v47  ;;  %v951_v55 = vld [vmem:[#allocation3 + $0x60] sm:$0xf]  ;;  %v1019_v56 = vld [vmem:[#allocation3 + $0x64] sm:$0xf]  ;;  %v279_v57 = vsel %vm278_vm1, %v276_v48, %v277_v31 }
  0xbf   : > { %328 = vst [vmem:[#allocation3 + $0x38] sm:$0xf] %v324_v50  ;;  %v952_v58 = vor.u32 %v1020_v52, %v951_v55  ;;  %v956_v59 = vor.u32 %v1019_v56, %v953_v53  ;;  %v281_v60 = vsel %vm280_vm12, %v273_v46, %v279_v57  ;;  %v1009_v20 = vld [vmem:[#allocation3 + $0x10] sm:$0xf0]  ;;  %v903_v49 = vld [vmem:[#allocation3] sm:$0xf] }
  0xc0   : > { %674 = vmatpush.bf16.msra.mxu2 %v948_v54  ;;  %285 = vst [vmem:[#allocation3 + $0xc] sm:$0xff] %v281_v60  ;;  %v1007_v51 = vld [vmem:[#allocation3 + $0x4] sm:$0xf] }
  0xc1   : > { %647 = vmatpush.bf16.msra.mxu0 %v952_v58  ;;  %660 = vmatpush.bf16.msra.mxu1 %v956_v59 }
  0xc2   : > { %v290_v61 = vpop.permute.xlu1 %289  ;;  %v358_v62 = vpop.permute.xlu0 %357 }
  0xc3   : > { %v292_v63 = vrot.slane %v290_v61, 4  ;;  %v361_v1 = vrot.slane %v358_v62, 4 }
  0xc5   : > { %v296_v2 = vsel %vm294_vm15, %v290_v61, %v292_v63  ;;  %v363_v3 = vsel %vm278_vm1, %v361_v1, %v362_v29  ;;  %v1015_v4 = vld [vmem:[#allocation3 + $0x40] sm:$0xf0]  ;;  %v912_v29 = vor.u32 %v1009_v20, %v911_v19 }
  0xc6   : > { %300 = vst [vmem:[#allocation3 + $0x20] sm:$0xf] %v296_v2  ;;  %v365_v5 = vsel %vm364_vm11, %v358_v62, %v363_v3  ;;  %v935_v6 = vld [vmem:[#allocation3 + $0x38] sm:$0xf] }
  0xc7   : > { %369 = vst [vmem:[#allocation3 + $0x54] sm:$0xff] %v365_v5  ;;  %v936_v7 = vor.u32 %v1015_v4, %v935_v6  ;;  %v1008_v50 = vld [vmem:[#allocation3 + $0x8] sm:$0xf0]  ;;  %v905_v52 = vld [vmem:[#allocation3 + $0xc] sm:$0xf0] }
  0xc8   : > { %v904_v53 = vor.u32 %v1008_v50, %v903_v49  ;;  %v908_v54 = vor.u32 %v1007_v51, %v905_v52 }
  0xc9   : > { %675 = vmatpush.bf16.msra.mxu2 %v936_v7 }
  0xca   : > { %v330_v8 = vpop.permute.xlu1 %329  ;;  %v316_v9 = vpop.permute.xlu0 %315 }
  0xcb   : > { %v333_v10 = vrot.slane %v330_v8, 4  ;;  %v319_v13 = vrot.slane %v316_v9, 4 }
  0xcd   : > { %v335_v16 = vsel %vm278_vm1, %v333_v10, %v334_v44  ;;  %v321_v17 = vsel %vm278_vm1, %v319_v13, %v320_v45  ;;  %v923_v18 = vld [vmem:[#allocation3 + $0x20] sm:$0xf] }
  0xce   : > { %v337_v21 = vsel %vm336_vm13, %v330_v8, %v335_v16  ;;  %v323_v22 = vsel %vm322_vm14, %v316_v9, %v321_v17  ;;  %v924_v23 = vor.u32 %v1012_v14, %v923_v18  ;;  %v1017_v24 = vld [vmem:[#allocation3 + $0x50] sm:$0xf0]  ;;  %v941_v26 = vld [vmem:[#allocation3 + $0x54] sm:$0xf0] }
  0xcf   : > { %341 = vst [vmem:[#allocation3 + $0x3c] sm:$0xff] %v337_v21  ;;  %v940_v27 = vor.u32 %v1017_v24, %v939_v15  ;;  %v944_v28 = vor.u32 %v1016_v25, %v941_v26 }
  0xd0   : > { %327 = vst [vmem:[#allocation3 + $0x30] sm:$0xff] %v323_v22  ;;  %676 = vmatpush.bf16.msra.mxu2 %v924_v23 }
  0xd1   : > { %648 = vmatpush.bf16.msra.mxu0 %v940_v27  ;;  %661 = vmatpush.bf16.msra.mxu1 %v944_v28 }
  0xd2   : > { %v302_v30 = vpop.permute.xlu1 %301  ;;  %v288_v31 = vpop.permute.xlu0 %287 }
  0xd3   : > { %v305_v32 = vrot.slane %v302_v30, 4  ;;  %v291_v33 = vrot.slane %v288_v31, 4 }
  0xd4   : > { %677 = vmatpush.bf16.msra.mxu2 %v912_v29 }
  0xd5   : > { %v307_v35 = vsel %vm278_vm1, %v305_v32, %v306_v12  ;;  %v293_v36 = vsel %vm278_vm1, %v291_v33, %v292_v63 }
  0xd6   : > { %v309_v37 = vsel %vm308_vm10, %v302_v30, %v307_v35  ;;  %v295_v38 = vsel %vm294_vm15, %v288_v31, %v293_v36  ;;  %v1014_v39 = vld [vmem:[#allocation3 + $0x38] sm:$0xf0]  ;;  %v929_v40 = vld [vmem:[#allocation3 + $0x3c] sm:$0xf0] }
  0xd7   : > { %313 = vst [vmem:[#allocation3 + $0x24] sm:$0xff] %v309_v37  ;;  %v927_v41 = vld [vmem:[#allocation3 + $0x30] sm:$0xf]  ;;  %v1013_v42 = vld [vmem:[#allocation3 + $0x34] sm:$0xf]  ;;  %678 = vmatmul.bf16.vlgmr.msra.gmra.mxu2 %v483_v34 }
  0xd8   : > { %299 = vst [vmem:[#allocation3 + $0x18] sm:$0xff] %v295_v38  ;;  %v928_v43 = vor.u32 %v1014_v39, %v927_v41  ;;  %v932_v44 = vor.u32 %v1013_v42, %v929_v40 }
  0xda   : > { %649 = vmatpush.bf16.msra.mxu0 %v928_v43  ;;  %662 = vmatpush.bf16.msra.mxu1 %v932_v44 }
  0xde   : > { %v1011_v11 = vld [vmem:[#allocation3 + $0x20] sm:$0xf0]  ;;  %v917_v45 = vld [vmem:[#allocation3 + $0x24] sm:$0xf0] }
  0xdf   : > { %v915_v12 = vld [vmem:[#allocation3 + $0x18] sm:$0xf]  ;;  %v1010_v46 = vld [vmem:[#allocation3 + $0x1c] sm:$0xf] }
  0xe0   : > { %v916_v47 = vor.u32 %v1011_v11, %v915_v12  ;;  %v920_v48 = vor.u32 %v1010_v46, %v917_v45 }
  0xe2   : > { %650 = vmatpush.bf16.msra.mxu0 %v916_v47  ;;  %663 = vmatpush.bf16.msra.mxu1 %v920_v48 }
  0xe6   : > { %651 = vmatpush.bf16.msra.mxu0 %v904_v53  ;;  %664 = vmatpush.bf16.msra.mxu1 %v908_v54 }
  0xe9   : > { %652 = vmatmul.bf16.vlgmr.msra.gmra.mxu0 %v483_v34  ;;  %665 = vmatmul.bf16.vlgmr.msra.gmra.mxu1 %v483_v34 }
 0x15a   : > { %v679_v55 = vpop.f32.mrf.mxu2 }
 0x15b   : > { %688 = vst [vmem:[%s685_s13 + $0x10] sm:$0xff] %v679_v55 }
 0x162   : > { %v681_v56 = vpop.f32.mrf.mxu2 }
 0x166   : > { %v653_v57 = vpop.f32.mrf.mxu0  ;;  %v666_v58 = vpop.f32.mrf.mxu1 }
 0x167   : > { %686 = vst [vmem:[%s685_s13] sm:$0xff] %v653_v57 }
 0x168   : > { %687 = vst [vmem:[%s685_s13 + $0x8] sm:$0xff] %v666_v58 }
 0x16a   : > { %692 = sbr.rel (%p998_p10) target bundleno = 369 (0x171), region = 48 }
 0x16e   : > { %v655_v59 = vpop.f32.mrf.mxu0  ;;  %v668_v60 = vpop.f32.mrf.mxu1 }
 0x16f   : > { %vm693_vm0 = vcmask 7168   ;;  %v1153_v61 = vmov 0.0  }
 0x170   : > { %694 = vst.msk [vmem:[#allocation4] sm:$0xff] %vm693_vm0, %v1153_v61 }
 0x171 PF: > { %v697_v62 = vperm.slane %v1226_v0, 0  ;;  %v698_v63 = vperm.slane %v1226_v0, 1  ;;  %v699_v1 = vperm.slane %v1226_v0, 2  ;;  %vm711_vm1 = vcmask 7168  }
 0x173   : > { %v703_v2 = vmul.f32 %v697_v62, %v653_v57  ;;  %v704_v3 = vmul.f32 %v698_v63, %v666_v58  ;;  %v705_v4 = vmul.f32 %v699_v1, %v679_v55 }
 0x175   : > { %v706_v5 = vadd.f32 %v704_v3, %v703_v2 }
 0x177   : > { %v707_v6 = vadd.f32 %v706_v5, %v705_v4  ;;  %v695_v7 = vld [vmem:[#allocation4] sm:$0xff] }
 0x179   : > { %708 = vadd.xlane.f32.xlu0 %v707_v6 }
 0x1ec   : > { %v709_v8 = vpop.xlane.xlu0 %708 }
 0x1ed   : > { %v710_v9 = vadd.f32 %v709_v8, %v695_v7 }
 0x1ef   : > { %712 = vst.msk [vmem:[#allocation4] sm:$0xff] %vm711_vm1, %v710_v9 }
 0x1f0 PF: > { %p999_p11 = scmp.ne.s32.totalorder %s1124_s19, 1 }
 0x1f1   : > { %s1032_s14 = smul.u32 (!%p999_p11), 24, %s1120_s18  ;;  %p1001_p12 = scmp.ne.s32.totalorder (!%p999_p11), %s1120_s18, 0 }
 0x1f2   : > { %716 = sbr.rel (%p999_p11) target bundleno = 751 (0x2ef), region = 52 }
 0x1f3   : > { %s721_s15 = scalar_lea.vmem (!%p999_p11), [#allocation2], %s1032_s14 }
 0x1f7   : > { %v717_v10 = vld [vmem:[#allocation4] sm:$0xff]  ;;  %v1154_v13 = vmov 0   ;;  %v722_v15 = vld [vmem:[%s721_s15] sm:$0xff]  ;;  %v723_v16 = vld [vmem:[%s721_s15 + $0x8] sm:$0xff]  ;;  %v734_v18 = vperm.slane %v1226_v0, 0  ;;  %v735_v19 = vperm.slane %v1226_v0, 1 }
 0x1f8   : > { %1094 = vset.pattern.permute.xlu0 %v1154_v13  ;;  %v718_v14 = vmul.f32 0.0017301039, %v717_v10  ;;  %v724_v17 = vld [vmem:[%s721_s15 + $0x10] sm:$0xff]  ;;  %v736_v20 = vperm.slane %v1226_v0, 2 }
 0x1fa   : > { %727 = vperm.xlu0 %1094, %v718_v14  }
 0x26b   : > { %746 = sbr.rel (%p1001_p12) target bundleno = 626 (0x272), region = 56 }
 0x26c   : > { %v728_v21 = vpop.permute.xlu0 %727 }
 0x26d   : > { %v730_v22 = vsub.f32 %v722_v15, %v728_v21  ;;  %v731_v23 = vsub.f32 %v723_v16, %v728_v21  ;;  %v732_v24 = vsub.f32 %v724_v17, %v728_v21 }
 0x26f   : > { %v740_v25 = vmul.f32 %v734_v18, %v730_v22  ;;  %v741_v26 = vmul.f32 %v735_v19, %v731_v23  ;;  %v742_v27 = vmul.f32 %v736_v20, %v732_v24 }
 0x270   : > { %vm747_vm2 = vcmask 7168   ;;  %v1155_v28 = vmov 0.0  }
 0x271   : > { %748 = vst.msk [vmem:[#allocation5] sm:$0xff] %vm747_vm2, %v1155_v28 }
 0x272 PF: > { %v750_v29 = vmul.f32 %v740_v25, %v740_v25  ;;  %v751_v30 = vmul.f32 %v741_v26, %v741_v26  ;;  %v752_v31 = vmul.f32 %v742_v27, %v742_v27  ;;  %vm758_vm3 = vcmask 7168  }
 0x274   : > { %v753_v32 = vadd.f32 %v751_v30, %v750_v29 }
 0x276   : > { %v754_v33 = vadd.f32 %v753_v32, %v752_v31 }
 0x278   : > { %755 = vadd.xlane.f32.xlu0 %v754_v33  ;;  %v749_v0 = vld [vmem:[#allocation5] sm:$0xff] }
 0x2eb   : > { %v756_v34 = vpop.xlane.xlu0 %755 }
 0x2ec   : > { %v757_v35 = vadd.f32 %v756_v34, %v749_v0 }
 0x2ee   : > { %759 = vst.msk [vmem:[#allocation5] sm:$0xff] %vm758_vm3, %v757_v35 }
 0x2ef PF: > { %p1002_p13 = scmp.ne.s32.totalorder %s1124_s19, 2 }
 0x2f0   : > { %s1033_s26 = smul.u32 (!%p1002_p13), 24, %s1120_s18 }
 0x2f1   : > { %763 = sbr.rel (%p1002_p13) target bundleno = 914 (0x392), region = 60 }
 0x2f2   : > { %s786_s27 = scalar_lea.vmem (!%p1002_p13), [#allocation2], %s1033_s26 }
 0x2f6   : > { %v766_v36 = vld [vmem:[#allocation5] sm:$0xff]  ;;  %v1156_v37 = vmov 0   ;;  %v764_v11 = vld [vmem:[#allocation4] sm:$0xff]  ;;  %v768_v45 = vld [vmem:[%s1329_s2] sm:$0xff] }
 0x2f7   : > { %1095 = vset.pattern.permute.xlu0 %v1156_v37  ;;  %v767_v38 = vmul.f32 0.0017301039, %v766_v36  ;;  %v765_v46 = vmul.f32 0.0017301039, %v764_v11  ;;  %v781_v50 = vld [vmem:[%s1330_s3] sm:$0xff]  ;;  %v788_v54 = vld [vmem:[%s786_s27 + $0x8] sm:$0xff] }
 0x2f8   : > { %v787_v53 = vld [vmem:[%s786_s27] sm:$0xff]  ;;  %v789_v55 = vld [vmem:[%s786_s27 + $0x10] sm:$0xff] }
 0x2f9   : > { %v769_v39 = vadd.f32 1e-05, %v767_v38 }
 0x2fb   : > { %1096 = vrsqrt.f32 %v769_v39  ;;  %vm776_vm4 = vweird.f32 %v769_v39 }
 0x301   : > { %v1097_v40 = vpop.eup %1096 }
 0x302   : > { %v771_v41 = vmul.f32 %v1097_v40, %v769_v39  ;;  %vm777_vm5 = vweird.f32 %v1097_v40 }
 0x303   : > { %vm778_vm6 = vmor %vm776_vm4, %vm777_vm5 }
 0x304   : > { %v772_v42 = vmul.f32 %v1097_v40, %v771_v41 }
 0x306   : > { %v773_v43 = vmul.f32 0.5, %v772_v42 }
 0x308   : > { %v774_v44 = vsub.f32 1.5, %v773_v43 }
 0x30a   : > { %v775_v12 = vmul.f32 %v1097_v40, %v774_v44 }
 0x30c   : > { %v779_v47 = vsel %vm778_vm6, %v1097_v40, %v775_v12 }
 0x30d   : > { %v780_v48 = vmul.f32 %v779_v47, %v768_v45 }
 0x30f   : > { %792 = vperm.xlu0 %1095, %v780_v48   ;;  %v782_v49 = vmul.f32 %v780_v48, %v765_v46 }
 0x311   : > { %v783_v51 = vsub.f32 %v781_v50, %v782_v49 }
 0x317   : > { %800 = vperm.xlu0 %1095, %v783_v51  }
 0x381   : > { %v793_v52 = vpop.permute.xlu0 %792 }
 0x382   : > { %v795_v56 = vmul.f32 %v793_v52, %v787_v53  ;;  %v796_v57 = vmul.f32 %v793_v52, %v788_v54  ;;  %v797_v58 = vmul.f32 %v793_v52, %v789_v55 }
 0x389   : > { %v801_v59 = vpop.permute.xlu0 %800 }
 0x38a   : > { %v803_v60 = vadd.f32 %v801_v59, %v795_v56  ;;  %v804_v61 = vadd.f32 %v801_v59, %v796_v57  ;;  %v805_v62 = vadd.f32 %v801_v59, %v797_v58 }
 0x38c   : > { %v806_v63 = vmax.f32 %v803_v60, 0.0  ;;  %v807_v1 = vmax.f32 %v804_v61, 0.0  ;;  %v808_v2 = vmax.f32 %v805_v62, 0.0 }
 0x38e   : > { %v809_v3 = vpack.c.bf16 %v807_v1, %v806_v63  ;;  %v810_v4 = vpack.c.bf16 %v808_v2, %v808_v2 }
 0x390   : > { %811 = vst [vmem:[%s1236_s11] sm:$0xff] %v809_v3 }
 0x391   : > { %812 = vst [vmem:[%s1236_s11 + $0x8] sm:$0xf] %v810_v4 }
 0x392 PF: > { %s15_s22 = sadd.s32 1, %s1136_s22   ;;  %s1333_s18 = smov %s1128_s20 }
 0x393   : > { %p12_p0 = scmp.ge.s32.totalorder %s15_s22, 8   ;;  %s1334_s19 = smov %s1132_s21 }
 0x394   : > { %s1335_s20 = smov %s1338_s23  ;;  %s1336_s21 = smov %s1342_s24 }
 0x395   :  { %14 = sbr.rel (!%p12_p0) target bundleno = 3 (0x3), region = 93 }

// kernel: up_block_forward.3
= control target key start
LH: loop header
LB: loop body
LE: loop exit
PB: predicated region body
PF: predicated region fallthrough
CT: control target
= control target key end

     0   :  { %s1217_s18 = smov 0   ;;  %s1219_s19 = smov 0   ;;  %s1365_s0 = inlined_call_operand.vmem [shape: bf16[2,8,512], index: 0, kind: input, shape index: {}]   ;;  %s1366_s1 = inlined_call_operand.vmem [shape: bf16[4,128], index: 1, kind: input, shape index: {}]   ;;  %s1367_s2 = inlined_call_operand.vmem [shape: f32[4,1], index: 2, kind: input, shape index: {}]   ;;  %s1368_s3 = inlined_call_operand.vmem [shape: f32[4,1], index: 3, kind: input, shape index: {}]   ;;  %s1369_s4 = inlined_call_operand.vmem [shape: f32[1,384], index: 4, kind: input, shape index: {}]   ;;  %s1370_s5 = inlined_call_operand.vmem [shape: f32[2,4,384], index: 5, kind: output, shape index: {}]  }
   0x1   :  { %s1221_s20 = smov 0   ;;  %s1223_s21 = smov 0  }
   0x2   :  { %s1225_s22 = smov 0  }
   0x3 LB: > { %s24_s23 = sadd.s32 1, %s1156_s20  ;;  %s27_s24 = sadd.s32 1, %s1160_s21  ;;  %s1164_s22 = sphi %s1225_s22, %s15_s22   ;;  %s1160_s21 = sphi %s1223_s21, %s1374_s21   ;;  %s1156_s20 = sphi %s1221_s20, %s1373_s20   ;;  %s1152_s19 = sphi %s1219_s19, %s1372_s19   ;;  %s1148_s18 = sphi %s1217_s18, %s1371_s18  }
   0x4   : > { %p25_p0 = scmp.ge.s32.totalorder %s24_s23, 2  ;;  %p922_p1 = scmp.ge.s32.totalorder %s1164_s22, 1 }
   0x5   : > { %p211_p2 = scmp.lt.s32.totalorder %s1164_s22, 7 }
   0x6   : > { %s1376_s23 = smov (%p25_p0, %s24_s23), 0  ;;  %s1378_s24 = smov (!%p25_p0, %s27_s24), %s1160_s21 }
   0x7   : > { %p212_p3 = pnand %p922_p1, %p211_p2  ;;  %p29_p4 = scmp.ge.s32.totalorder %s1378_s24, 3 }
   0x8   : > { %p243_p5 = scmp.eq.s32.totalorder (!%p212_p3), %s1152_s19, 0  ;;  %p252_p6 = scmp.eq.s32.totalorder (!%p212_p3), %s1152_s19, 2 }
   0x9   : > { %s1380_s24 = smov (%p29_p4, %s1378_s24), 0  ;;  %215 = sbr.rel (%p212_p3) target bundleno = 926 (0x39e), region = 40 }
   0xa   : > { %p926_p9 = scmp.ne.s32.totalorder (!%p212_p3), %s1152_s19, 0 }
   0xe   : > { %v1256_v0 = vld [vmem:[%s1369_s4] sm:$0x7]  ;;  %s244_s27 = scalar_select %p243_p5, %s1148_s18, 0 }
   0xf   : > { %s253_s28 = scalar_select %p252_p6, %s1148_s18, 0 }
  0x10   : > { %p245_p7 = scmp.lt.s32.totalorder %s244_s27, 1  ;;  %s1166_s12 = smov (!%p926_p9), 65  }
  0x11   : > { %p254_p8 = scmp.lt.s32.totalorder %s253_s28, 1  ;;  %s1167_s13 = smov (!%p926_p9), 63  }
  0x12   : > { %s1382_s27 = smov (!%p245_p7, %s244_s27), 1  ;;  %265 = sbr.rel (%p926_p9) target bundleno = 497 (0x1f1), region = 44 }
  0x13   : > { %s1384_s28 = smov (!%p254_p8, %s253_s28), 1  ;;  %s1032_s29 = sshll.u32 %s1382_s27, 4 }
  0x14   : > { %s249_s7 = scalar_lea.vmem %s1365_s0, %s1032_s29  ;;  %s1060_s8 = smul.u32 12, %s1384_s28 }
  0x15   : > { %s1168_s14 = smov (!%p926_p9), 64   ;;  %s1169_s15 = smov (!%p926_p9), 62  }
  0x16   : > { %s1266_s11 = scalar_lea.vmem %s1370_s5, %s1060_s8  ;;  %s1170_s16 = smov (!%p926_p9), 83  }
  0x17   : > { %v267_v1 = vld [vmem:[%s249_s7 + $0x8] sm:$0xff]  ;;  %v266_v2 = vld [vmem:[%s249_s7] sm:$0xff]  ;;  %s1171_s17 = smov 84   ;;  %s1172_s25 = smov 86   ;;  %vm434_vm0 = vcmask 531456   ;;  %vm278_vm1 = vcmask 1043456  }
  0x18   : > { %429 = vrot.lane.b32.xlu1 %v267_v1, %s1166_s12  ;;  %269 = vst [vmem:[#allocation3 + $0x8] sm:$0xf] %v267_v1  ;;  %457 = vrot.lane.b32.xlu0 %v267_v1, %s1167_s13  ;;  %s1173_s26 = smov 85   ;;  %s1174_s27 = smov 105   ;;  %vm462_vm2 = vcmask 515072   ;;  %vm392_vm3 = vcmask 695296  }
  0x19   : > { %455 = vrot.lane.b32.xlu2 %v266_v2, %s1167_s13  ;;  %268 = vst [vmem:[#allocation3] sm:$0xff] %v266_v2  ;;  %s1175_s28 = smov 104   ;;  %s1176_s29 = smov 106   ;;  %vm448_vm4 = vcmask 523264   ;;  %vm476_vm5 = vcmask 506880   ;;  %vm350_vm6 = vcmask 859136  }
  0x1a   : > { %s1177_s30 = smov 107   ;;  %s1178_s6 = smov 126   ;;  %vm420_vm7 = vcmask 678912   ;;  %vm406_vm8 = vcmask 687104   ;;  %vm378_vm9 = vcmask 703488   ;;  %vm308_vm10 = vcmask 1022976  }
  0x1b   : > { %s1179_s7 = smov 125   ;;  %s1180_s8 = smov 127   ;;  %vm364_vm11 = vcmask 850944   ;;  %vm280_vm12 = vcmask 1039360   ;;  %vm336_vm13 = vcmask 867328   ;;  %vm322_vm14 = vcmask 875520  }
  0x1c   : > { %vm294_vm15 = vcmask 1031168   ;;  %p1024_p10 = scmp.ne.s32.totalorder %s1148_s18, 0 }
  0x20   : > { %443 = vrot.lane.b32.xlu1 %v267_v1, %s1168_s14  ;;  %471 = vrot.lane.b32.xlu0 %v267_v1, %s1169_s15 }
  0x21   : > { %469 = vrot.lane.b32.xlu2 %v266_v2, %s1169_s15 }
  0x28   : > { %415 = vrot.lane.b32.xlu1 %v267_v1, %s1170_s16  ;;  %401 = vrot.lane.b32.xlu0 %v267_v1, %s1171_s17 }
  0x29   : > { %427 = vrot.lane.b32.xlu2 %v266_v2, %s1166_s12  ;;  %s1057_s12 = smul.u32 12, %s1148_s18 }
  0x2b   : > { %s691_s13 = scalar_lea.vmem [#allocation2], %s1057_s12 }
  0x30   : > { %373 = vrot.lane.b32.xlu1 %v267_v1, %s1172_s25  ;;  %441 = vrot.lane.b32.xlu0 %v266_v2, %s1168_s14 }
  0x31   : > { %387 = vrot.lane.b32.xlu2 %v267_v1, %s1173_s26 }
  0x38   : > { %413 = vrot.lane.b32.xlu1 %v266_v2, %s1170_s16  ;;  %399 = vrot.lane.b32.xlu0 %v266_v2, %s1171_s17 }
  0x39   : > { %345 = vrot.lane.b32.xlu2 %v267_v1, %s1174_s27 }
  0x40   : > { %371 = vrot.lane.b32.xlu1 %v266_v2, %s1172_s25  ;;  %359 = vrot.lane.b32.xlu0 %v267_v1, %s1175_s28 }
  0x41   : > { %385 = vrot.lane.b32.xlu2 %v266_v2, %s1173_s26 }
  0x48   : > { %331 = vrot.lane.b32.xlu1 %v267_v1, %s1176_s29  ;;  %317 = vrot.lane.b32.xlu0 %v267_v1, %s1177_s30 }
  0x49   : > { %343 = vrot.lane.b32.xlu2 %v266_v2, %s1174_s27 }
  0x50   : > { %289 = vrot.lane.b32.xlu1 %v267_v1, %s1178_s6  ;;  %357 = vrot.lane.b32.xlu0 %v266_v2, %s1175_s28 }
  0x51   : > { %303 = vrot.lane.b32.xlu2 %v267_v1, %s1179_s7 }
  0x58   : > { %329 = vrot.lane.b32.xlu1 %v266_v2, %s1176_s29  ;;  %315 = vrot.lane.b32.xlu0 %v266_v2, %s1177_s30 }
  0x59   : > { %274 = vrot.lane.b32.xlu2 %v267_v1, %s1180_s8 }
  0x60   : > { %301 = vrot.lane.b32.xlu1 %v266_v2, %s1179_s7  ;;  %287 = vrot.lane.b32.xlu0 %v266_v2, %s1178_s6 }
  0x61   : > { %272 = vrot.lane.b32.xlu2 %v266_v2, %s1180_s8 }
  0x73   : > { %v456_v3 = vpop.permute.xlu2 %455 }
  0x74   : > { %v459_v6 = vrot.slane %v456_v3, 4 }
  0x7b   : > { %v470_v4 = vpop.permute.xlu2 %469 }
  0x7c   : > { %v473_v21 = vrot.slane %v470_v4, 4 }
  0x83   : > { %v428_v5 = vpop.permute.xlu2 %427 }
  0x84   : > { %v431_v7 = vrot.slane %v428_v5, 4 }
  0x8a   : > { %v430_v8 = vpop.permute.xlu1 %429  ;;  %v458_v9 = vpop.permute.xlu0 %457 }
  0x8b   : > { %v432_v10 = vrot.slane %v430_v8, 4  ;;  %v460_v11 = vrot.slane %v458_v9, 4  ;;  %v388_v12 = vpop.permute.xlu2 %387 }
  0x8c   : > { %v390_v13 = vrot.slane %v388_v12, 4 }
  0x8d   : > { %v436_v14 = vsel %vm434_vm0, %v430_v8, %v432_v10  ;;  %v461_v15 = vsel %vm278_vm1, %v459_v6, %v460_v11  ;;  %v464_v16 = vsel %vm462_vm2, %v458_v9, %v460_v11  ;;  %v433_v17 = vsel %vm278_vm1, %v431_v7, %v432_v10 }
  0x8e   : > { %440 = vst [vmem:[#allocation3 + $0x98] sm:$0xf] %v436_v14  ;;  %v463_v18 = vsel %vm462_vm2, %v456_v3, %v461_v15  ;;  %v435_v19 = vsel %vm434_vm0, %v428_v5, %v433_v17  ;;  %v394_v20 = vsel %vm392_vm3, %v388_v12, %v390_v13 }
  0x8f   : > { %467 = vst [vmem:[#allocation3 + $0xa8] sm:$0xff] %v463_v18 }
  0x90   : > { %468 = vst [vmem:[#allocation3 + $0xb0] sm:$0xf] %v464_v16 }
  0x91   : > { %439 = vst [vmem:[#allocation3 + $0x90] sm:$0xff] %v435_v19 }
  0x92   : > { %v444_v22 = vpop.permute.xlu1 %443  ;;  %v472_v23 = vpop.permute.xlu0 %471  ;;  %398 = vst [vmem:[#allocation3 + $0x74] sm:$0xf] %v394_v20 }
  0x93   : > { %v446_v24 = vrot.slane %v444_v22, 4  ;;  %v474_v25 = vrot.slane %v472_v23, 4  ;;  %v346_v26 = vpop.permute.xlu2 %345 }
  0x94   : > { %v348_v27 = vrot.slane %v346_v26, 4 }
  0x95   : > { %v450_v28 = vsel %vm448_vm4, %v444_v22, %v446_v24  ;;  %v475_v29 = vsel %vm278_vm1, %v473_v21, %v474_v25  ;;  %v478_v30 = vsel %vm476_vm5, %v472_v23, %v474_v25  ;;  %v1009_v57 = vld [vmem:[#allocation3 + $0x98] sm:$0xf] }
  0x96   : > { %454 = vst [vmem:[#allocation3 + $0xa4] sm:$0xf] %v450_v28  ;;  %v477_v31 = vsel %vm476_vm5, %v470_v4, %v475_v29  ;;  %v352_v32 = vsel %vm350_vm6, %v346_v26, %v348_v27  ;;  %v1013_v41 = vld [vmem:[#allocation3 + $0xa8] sm:$0xf]  ;;  %v1054_v42 = vld [vmem:[#allocation3 + $0xac] sm:$0xf] }
  0x97   : > { %481 = vst [vmem:[#allocation3 + $0xb4] sm:$0xff] %v477_v31  ;;  %v1021_v46 = vld [vmem:[#allocation3 + $0xb0] sm:$0xf] }
  0x98   : > { %482 = vst [vmem:[#allocation3 + $0xbc] sm:$0xf] %v478_v30  ;;  %v1001_v16 = vld [vmem:[#allocation3 + $0x90] sm:$0xf]  ;;  %v1051_v21 = vld [vmem:[#allocation3 + $0x94] sm:$0xf] }
  0x99   : > { %356 = vst [vmem:[#allocation3 + $0x50] sm:$0xf] %v352_v32  ;;  %v1047_v10 = vld [vmem:[#allocation3 + $0x70] sm:$0xf0] }
  0x9a   : > { %v416_v33 = vpop.permute.xlu1 %415  ;;  %v402_v34 = vpop.permute.xlu0 %401 }
  0x9b   : > { %v418_v35 = vrot.slane %v416_v33, 4  ;;  %v404_v36 = vrot.slane %v402_v34, 4  ;;  %v386_v37 = vpop.permute.xlu2 %385 }
  0x9c   : > { %v389_v38 = vrot.slane %v386_v37, 4 }
  0x9d   : > { %v422_v39 = vsel %vm420_vm7, %v416_v33, %v418_v35  ;;  %v408_v40 = vsel %vm406_vm8, %v402_v34, %v404_v36  ;;  %v1053_v52 = vld [vmem:[#allocation3 + $0xa0] sm:$0xf0] }
  0x9e   : > { %426 = vst [vmem:[#allocation3 + $0x8c] sm:$0xf] %v422_v39  ;;  %v1055_v43 = vld [vmem:[#allocation3 + $0xb0] sm:$0xf0]  ;;  %v1015_v44 = vld [vmem:[#allocation3 + $0xb4] sm:$0xf0]  ;;  %v391_v45 = vsel %vm278_vm1, %v389_v38, %v390_v13  ;;  %v1010_v59 = vor.u32 %v1053_v52, %v1009_v57 }
  0x9f   : > { %412 = vst [vmem:[#allocation3 + $0x80] sm:$0xf] %v408_v40  ;;  %v1056_v47 = vld [vmem:[#allocation3 + $0xb8] sm:$0xf0]  ;;  %v1014_v48 = vor.u32 %v1055_v43, %v1013_v41  ;;  %v1018_v49 = vor.u32 %v1054_v42, %v1015_v44  ;;  %v393_v50 = vsel %vm392_vm3, %v386_v37, %v391_v45 }
  0xa0   : > { %v1022_v51 = vor.u32 %v1056_v47, %v1021_v46  ;;  %397 = vst [vmem:[#allocation3 + $0x6c] sm:$0xff] %v393_v50  ;;  %v973_v47 = vld [vmem:[#allocation3 + $0x50] sm:$0xf] }
  0xa1   : > { %644 = vmatpush.bf16.msra.mxu0 %v1014_v48  ;;  %657 = vmatpush.bf16.msra.mxu1 %v1018_v49 }
  0xa2   : > { %670 = vmatpush.bf16.msra.mxu2 %v1022_v51  ;;  %v374_v53 = vpop.permute.xlu1 %373  ;;  %v442_v54 = vpop.permute.xlu0 %441 }
  0xa3   : > { %v376_v55 = vrot.slane %v374_v53, 4  ;;  %v445_v56 = vrot.slane %v442_v54, 4  ;;  %v344_v58 = vpop.permute.xlu2 %343 }
  0xa4   : > { %v347_v60 = vrot.slane %v344_v58, 4 }
  0xa5   : > { %v380_v61 = vsel %vm378_vm9, %v374_v53, %v376_v55  ;;  %v447_v62 = vsel %vm278_vm1, %v445_v56, %v446_v24  ;;  %v1050_v63 = vld [vmem:[#allocation3 + $0x88] sm:$0xf0] }
  0xa6   : > { %384 = vst [vmem:[#allocation3 + $0x68] sm:$0xf] %v380_v61  ;;  %v449_v1 = vsel %vm448_vm4, %v442_v54, %v447_v62  ;;  %671 = vmatpush.bf16.msra.mxu2 %v1010_v59  ;;  %v997_v2 = vld [vmem:[#allocation3 + $0x80] sm:$0xf]  ;;  %v349_v3 = vsel %vm278_vm1, %v347_v60, %v348_v27 }
  0xa7   : > { %453 = vst [vmem:[#allocation3 + $0x9c] sm:$0xff] %v449_v1  ;;  %v998_v4 = vor.u32 %v1050_v63, %v997_v2  ;;  %v351_v5 = vsel %vm350_vm6, %v344_v58, %v349_v3  ;;  %v1046_v52 = vld [vmem:[#allocation3 + $0x68] sm:$0xf0]  ;;  %v979_v53 = vld [vmem:[#allocation3 + $0x6c] sm:$0xf0] }
  0xa8   : > { %355 = vst [vmem:[#allocation3 + $0x48] sm:$0xff] %v351_v5 }
  0xaa   : > { %672 = vmatpush.bf16.msra.mxu2 %v998_v4  ;;  %v414_v6 = vpop.permute.xlu1 %413  ;;  %v400_v7 = vpop.permute.xlu0 %399 }
  0xab   : > { %v417_v8 = vrot.slane %v414_v6, 4  ;;  %v403_v9 = vrot.slane %v400_v7, 4  ;;  %v1286_v11 = vpop.permute.xlu2 %303 }
  0xac   : > { %v306_v12 = vrot.slane %v1286_v11, 4 }
  0xad   : > { %v419_v13 = vsel %vm278_vm1, %v417_v8, %v418_v35  ;;  %v405_v14 = vsel %vm278_vm1, %v403_v9, %v404_v36  ;;  %v985_v15 = vld [vmem:[#allocation3 + $0x68] sm:$0xf] }
  0xae   : > { %v421_v17 = vsel %vm420_vm7, %v414_v6, %v419_v13  ;;  %v407_v18 = vsel %vm406_vm8, %v400_v7, %v405_v14  ;;  %v986_v19 = vor.u32 %v1047_v10, %v985_v15  ;;  %v1052_v20 = vld [vmem:[#allocation3 + $0x98] sm:$0xf0]  ;;  %v1003_v22 = vld [vmem:[#allocation3 + $0x9c] sm:$0xf0]  ;;  %v310_v23 = vsel %vm308_vm10, %v1286_v11, %v306_v12 }
  0xaf   : > { %425 = vst [vmem:[#allocation3 + $0x84] sm:$0xff] %v421_v17  ;;  %v1002_v24 = vor.u32 %v1052_v20, %v1001_v16  ;;  %v1006_v25 = vor.u32 %v1051_v21, %v1003_v22  ;;  %v965_v15 = vld [vmem:[#allocation3 + $0x48] sm:$0xf] }
  0xb0   : > { %411 = vst [vmem:[#allocation3 + $0x78] sm:$0xff] %v407_v18  ;;  %673 = vmatpush.bf16.msra.mxu2 %v986_v19  ;;  %v937_v19 = vld [vmem:[#allocation3 + $0x8] sm:$0xf] }
  0xb1   : > { %645 = vmatpush.bf16.msra.mxu0 %v1002_v24  ;;  %658 = vmatpush.bf16.msra.mxu1 %v1006_v25  ;;  %314 = vst [vmem:[#allocation3 + $0x2c] sm:$0xf] %v310_v23  ;;  %v1042_v25 = vld [vmem:[#allocation3 + $0x4c] sm:$0xf] }
  0xb2   : > { %v372_v26 = vpop.permute.xlu1 %371  ;;  %v360_v27 = vpop.permute.xlu0 %359 }
  0xb3   : > { %v375_v28 = vrot.slane %v372_v26, 4  ;;  %v362_v29 = vrot.slane %v360_v27, 4  ;;  %v275_v30 = vpop.permute.xlu2 %274 }
  0xb4   : > { %v277_v31 = vrot.slane %v275_v30, 4 }
  0xb5   : > { %v377_v32 = vsel %vm278_vm1, %v375_v28, %v376_v55  ;;  %v366_v33 = vsel %vm364_vm11, %v360_v27, %v362_v29 }
  0xb6   : > { %v379_v34 = vsel %vm378_vm9, %v372_v26, %v377_v32  ;;  %370 = vst [vmem:[#allocation3 + $0x5c] sm:$0xf] %v366_v33  ;;  %v1049_v35 = vld [vmem:[#allocation3 + $0x80] sm:$0xf0]  ;;  %v991_v36 = vld [vmem:[#allocation3 + $0x84] sm:$0xf0]  ;;  %v282_v37 = vsel %vm280_vm12, %v275_v30, %v277_v31 }
  0xb7   : > { %383 = vst [vmem:[#allocation3 + $0x60] sm:$0xff] %v379_v34  ;;  %v989_v38 = vld [vmem:[#allocation3 + $0x78] sm:$0xf]  ;;  %v1048_v39 = vld [vmem:[#allocation3 + $0x7c] sm:$0xf] }
  0xb8   : > { %v990_v40 = vor.u32 %v1049_v35, %v989_v38  ;;  %v994_v41 = vor.u32 %v1048_v39, %v991_v36  ;;  %286 = vst [vmem:[#allocation3 + $0x14] sm:$0xf] %v282_v37  ;;  %v1038_v14 = vld [vmem:[#allocation3 + $0x28] sm:$0xf0]  ;;  %v483_v34 = vld [vmem:[%s1366_s1] sm:$0x3] }
  0xba   : > { %646 = vmatpush.bf16.msra.mxu0 %v990_v40  ;;  %659 = vmatpush.bf16.msra.mxu1 %v994_v41  ;;  %v332_v42 = vpop.permute.xlu1 %331  ;;  %v318_v43 = vpop.permute.xlu0 %317 }
  0xbb   : > { %v334_v44 = vrot.slane %v332_v42, 4  ;;  %v320_v45 = vrot.slane %v318_v43, 4  ;;  %v273_v46 = vpop.permute.xlu2 %272 }
  0xbc   : > { %v276_v48 = vrot.slane %v273_v46, 4 }
  0xbd   : > { %v338_v49 = vsel %vm336_vm13, %v332_v42, %v334_v44  ;;  %v324_v50 = vsel %vm322_vm14, %v318_v43, %v320_v45  ;;  %v1044_v51 = vld [vmem:[#allocation3 + $0x58] sm:$0xf0] }
  0xbe   : > { %342 = vst [vmem:[#allocation3 + $0x44] sm:$0xf] %v338_v49  ;;  %v974_v54 = vor.u32 %v1044_v51, %v973_v47  ;;  %v977_v55 = vld [vmem:[#allocation3 + $0x60] sm:$0xf]  ;;  %v1045_v56 = vld [vmem:[#allocation3 + $0x64] sm:$0xf]  ;;  %v279_v57 = vsel %vm278_vm1, %v276_v48, %v277_v31 }
  0xbf   : > { %328 = vst [vmem:[#allocation3 + $0x38] sm:$0xf] %v324_v50  ;;  %v978_v58 = vor.u32 %v1046_v52, %v977_v55  ;;  %v982_v59 = vor.u32 %v1045_v56, %v979_v53  ;;  %v281_v60 = vsel %vm280_vm12, %v273_v46, %v279_v57  ;;  %v1035_v20 = vld [vmem:[#allocation3 + $0x10] sm:$0xf0]  ;;  %v929_v49 = vld [vmem:[#allocation3] sm:$0xf] }
  0xc0   : > { %674 = vmatpush.bf16.msra.mxu2 %v974_v54  ;;  %285 = vst [vmem:[#allocation3 + $0xc] sm:$0xff] %v281_v60  ;;  %v1033_v51 = vld [vmem:[#allocation3 + $0x4] sm:$0xf] }
  0xc1   : > { %647 = vmatpush.bf16.msra.mxu0 %v978_v58  ;;  %660 = vmatpush.bf16.msra.mxu1 %v982_v59 }
  0xc2   : > { %v290_v61 = vpop.permute.xlu1 %289  ;;  %v358_v62 = vpop.permute.xlu0 %357 }
  0xc3   : > { %v292_v63 = vrot.slane %v290_v61, 4  ;;  %v361_v1 = vrot.slane %v358_v62, 4 }
  0xc5   : > { %v296_v2 = vsel %vm294_vm15, %v290_v61, %v292_v63  ;;  %v363_v3 = vsel %vm278_vm1, %v361_v1, %v362_v29  ;;  %v1041_v4 = vld [vmem:[#allocation3 + $0x40] sm:$0xf0]  ;;  %v938_v29 = vor.u32 %v1035_v20, %v937_v19 }
  0xc6   : > { %300 = vst [vmem:[#allocation3 + $0x20] sm:$0xf] %v296_v2  ;;  %v365_v5 = vsel %vm364_vm11, %v358_v62, %v363_v3  ;;  %v961_v6 = vld [vmem:[#allocation3 + $0x38] sm:$0xf] }
  0xc7   : > { %369 = vst [vmem:[#allocation3 + $0x54] sm:$0xff] %v365_v5  ;;  %v962_v7 = vor.u32 %v1041_v4, %v961_v6  ;;  %v1034_v50 = vld [vmem:[#allocation3 + $0x8] sm:$0xf0]  ;;  %v931_v52 = vld [vmem:[#allocation3 + $0xc] sm:$0xf0] }
  0xc8   : > { %v930_v53 = vor.u32 %v1034_v50, %v929_v49  ;;  %v934_v54 = vor.u32 %v1033_v51, %v931_v52 }
  0xc9   : > { %675 = vmatpush.bf16.msra.mxu2 %v962_v7 }
  0xca   : > { %v330_v8 = vpop.permute.xlu1 %329  ;;  %v316_v9 = vpop.permute.xlu0 %315 }
  0xcb   : > { %v333_v10 = vrot.slane %v330_v8, 4  ;;  %v319_v13 = vrot.slane %v316_v9, 4 }
  0xcd   : > { %v335_v16 = vsel %vm278_vm1, %v333_v10, %v334_v44  ;;  %v321_v17 = vsel %vm278_vm1, %v319_v13, %v320_v45  ;;  %v949_v18 = vld [vmem:[#allocation3 + $0x20] sm:$0xf] }
  0xce   : > { %v337_v21 = vsel %vm336_vm13, %v330_v8, %v335_v16  ;;  %v323_v22 = vsel %vm322_vm14, %v316_v9, %v321_v17  ;;  %v950_v23 = vor.u32 %v1038_v14, %v949_v18  ;;  %v1043_v24 = vld [vmem:[#allocation3 + $0x50] sm:$0xf0]  ;;  %v967_v26 = vld [vmem:[#allocation3 + $0x54] sm:$0xf0] }
  0xcf   : > { %341 = vst [vmem:[#allocation3 + $0x3c] sm:$0xff] %v337_v21  ;;  %v966_v27 = vor.u32 %v1043_v24, %v965_v15  ;;  %v970_v28 = vor.u32 %v1042_v25, %v967_v26 }
  0xd0   : > { %327 = vst [vmem:[#allocation3 + $0x30] sm:$0xff] %v323_v22  ;;  %676 = vmatpush.bf16.msra.mxu2 %v950_v23 }
  0xd1   : > { %648 = vmatpush.bf16.msra.mxu0 %v966_v27  ;;  %661 = vmatpush.bf16.msra.mxu1 %v970_v28 }
  0xd2   : > { %v302_v30 = vpop.permute.xlu1 %301  ;;  %v288_v31 = vpop.permute.xlu0 %287 }
  0xd3   : > { %v305_v32 = vrot.slane %v302_v30, 4  ;;  %v291_v33 = vrot.slane %v288_v31, 4 }
  0xd4   : > { %677 = vmatpush.bf16.msra.mxu2 %v938_v29 }
  0xd5   : > { %v307_v35 = vsel %vm278_vm1, %v305_v32, %v306_v12  ;;  %v293_v36 = vsel %vm278_vm1, %v291_v33, %v292_v63 }
  0xd6   : > { %v309_v37 = vsel %vm308_vm10, %v302_v30, %v307_v35  ;;  %v295_v38 = vsel %vm294_vm15, %v288_v31, %v293_v36  ;;  %v1040_v39 = vld [vmem:[#allocation3 + $0x38] sm:$0xf0]  ;;  %v955_v40 = vld [vmem:[#allocation3 + $0x3c] sm:$0xf0] }
  0xd7   : > { %313 = vst [vmem:[#allocation3 + $0x24] sm:$0xff] %v309_v37  ;;  %v953_v41 = vld [vmem:[#allocation3 + $0x30] sm:$0xf]  ;;  %v1039_v42 = vld [vmem:[#allocation3 + $0x34] sm:$0xf]  ;;  %678 = vmatmul.bf16.vlgmr.msra.gmra.mxu2 %v483_v34 }
  0xd8   : > { %299 = vst [vmem:[#allocation3 + $0x18] sm:$0xff] %v295_v38  ;;  %v954_v43 = vor.u32 %v1040_v39, %v953_v41  ;;  %v958_v44 = vor.u32 %v1039_v42, %v955_v40 }
  0xda   : > { %649 = vmatpush.bf16.msra.mxu0 %v954_v43  ;;  %662 = vmatpush.bf16.msra.mxu1 %v958_v44 }
  0xde   : > { %v1037_v11 = vld [vmem:[#allocation3 + $0x20] sm:$0xf0]  ;;  %v943_v45 = vld [vmem:[#allocation3 + $0x24] sm:$0xf0] }
  0xdf   : > { %v941_v12 = vld [vmem:[#allocation3 + $0x18] sm:$0xf]  ;;  %v1036_v46 = vld [vmem:[#allocation3 + $0x1c] sm:$0xf] }
  0xe0   : > { %v942_v47 = vor.u32 %v1037_v11, %v941_v12  ;;  %v946_v48 = vor.u32 %v1036_v46, %v943_v45 }
  0xe2   : > { %650 = vmatpush.bf16.msra.mxu0 %v942_v47  ;;  %663 = vmatpush.bf16.msra.mxu1 %v946_v48 }
  0xe6   : > { %651 = vmatpush.bf16.msra.mxu0 %v930_v53  ;;  %664 = vmatpush.bf16.msra.mxu1 %v934_v54 }
  0xe9   : > { %652 = vmatmul.bf16.vlgmr.msra.gmra.mxu0 %v483_v34  ;;  %665 = vmatmul.bf16.vlgmr.msra.gmra.mxu1 %v483_v34 }
 0x15a   : > { %v679_v55 = vpop.f32.mrf.mxu2 }
 0x15b   : > { %693 = vst [vmem:[%s691_s13 + $0x8] sm:$0xf] %v679_v55 }
 0x162   : > { %v681_v56 = vpop.f32.mrf.mxu2 }
 0x166   : > { %v653_v57 = vpop.f32.mrf.mxu0  ;;  %v666_v58 = vpop.f32.mrf.mxu1 }
 0x167   : > { %v685_v59 = vrot.slane %v666_v58, 4 }
 0x169   : > { %v687_v60 = vsel %vm278_vm1, %v653_v57, %v685_v59 }
 0x16a   : > { %692 = vst [vmem:[%s691_s13] sm:$0xff] %v687_v60  ;;  %697 = sbr.rel (%p1024_p10) target bundleno = 369 (0x171), region = 48 }
 0x16e   : > { %v655_v61 = vpop.f32.mrf.mxu0  ;;  %v668_v62 = vpop.f32.mrf.mxu1 }
 0x16f   : > { %vm698_vm0 = vcmask 3072   ;;  %v1181_v63 = vmov 0.0  }
 0x170   : > { %699 = vst.msk [vmem:[#allocation4] sm:$0xf] %vm698_vm0, %v1181_v63 }
 0x171 PF: > { %v702_v1 = vperm.slane %v1256_v0, 0  ;;  %v703_v2 = vperm.slane %v1256_v0, 1  ;;  %v704_v3 = vperm.slane %v1256_v0, 2  ;;  %vm719_vm2 = vcmask 3072  }
 0x173   : > { %v708_v4 = vmul.f32 %v702_v1, %v653_v57  ;;  %v709_v5 = vmul.f32 %v703_v2, %v666_v58  ;;  %v710_v6 = vmul.f32 %v704_v3, %v679_v55 }
 0x175   : > { %v711_v7 = vsel %vm278_vm1, %v708_v4, 0.0  ;;  %v712_v8 = vsel %vm278_vm1, %v709_v5, 0.0  ;;  %v714_v9 = vsel %vm278_vm1, %v710_v6, 0.0 }
 0x176   : > { %v713_v10 = vadd.f32 %v712_v8, %v711_v7 }
 0x177   : > { %v700_v14 = vld [vmem:[#allocation4] sm:$0xf] }
 0x178   : > { %v715_v13 = vadd.f32 %v714_v9, %v713_v10 }
 0x17a   : > { %716 = vadd.xlane.f32.xlu0 %v715_v13 }
 0x1ed   : > { %v717_v15 = vpop.xlane.xlu0 %716 }
 0x1ee   : > { %v718_v16 = vadd.f32 %v717_v15, %v700_v14 }
 0x1f0   : > { %720 = vst.msk [vmem:[#allocation4] sm:$0xf] %vm719_vm2, %v718_v16 }
 0x1f1 PF: > { %p1025_p11 = scmp.ne.s32.totalorder %s1152_s19, 1 }
 0x1f2   : > { %s1058_s14 = smul.u32 (!%p1025_p11), 12, %s1148_s18  ;;  %p1027_p12 = scmp.ne.s32.totalorder (!%p1025_p11), %s1148_s18, 0 }
 0x1f3   : > { %724 = sbr.rel (%p1025_p11) target bundleno = 763 (0x2fb), region = 52 }
 0x1f4   : > { %s729_s15 = scalar_lea.vmem (!%p1025_p11), [#allocation2], %s1058_s14 }
 0x1f8   : > { %v725_v17 = vld [vmem:[#allocation4] sm:$0xf]  ;;  %v1182_v18 = vmov 0   ;;  %v1183_v20 = vmov 839922192   ;;  %v745_v22 = vperm.slane %v1256_v0, 1 }
 0x1f9   : > { %1122 = vset.pattern.permute.xlu0 %v1182_v18  ;;  %v726_v19 = vmul.f32 0.0015432099, %v725_v17  ;;  %v737_v21 = vunpack.c.l.s4 %v1183_v20  ;;  %v744_v24 = vperm.slane %v1256_v0, 0  ;;  %vm749_vm1 = vcmask 1043456   ;;  %v730_v26 = vld [vmem:[%s729_s15] sm:$0xff] }
 0x1fa   : > { %v748_v25 = vrot.slane %v745_v22, 4  ;;  %v731_v27 = vld [vmem:[%s729_s15 + $0x8] sm:$0xf]  ;;  %v746_v29 = vperm.slane %v1256_v0, 2 }
 0x1fb   : > { %734 = vperm.xlu0 %1122, %v726_v19   ;;  %v738_v23 = vunpack.c.0.s8 %v737_v21 }
 0x1fc   : > { %v750_v31 = vsel %vm749_vm1, %v744_v24, %v748_v25 }
 0x26d   : > { %v735_v28 = vpop.permute.xlu0 %734 }
 0x26e   : > { %v739_v30 = vperm.slane %v735_v28, %v738_v23  ;;  %757 = sbr.rel (%p1027_p12) target bundleno = 629 (0x275), region = 56 }
 0x270   : > { %v741_v32 = vsub.f32 %v730_v26, %v739_v30  ;;  %v742_v33 = vsub.f32 %v731_v27, %v739_v30 }
 0x272   : > { %v752_v34 = vmul.f32 %v750_v31, %v741_v32  ;;  %v753_v35 = vmul.f32 %v746_v29, %v742_v33 }
 0x273   : > { %vm758_vm3 = vcmask 3072   ;;  %v1184_v36 = vmov 0.0  }
 0x274   : > { %759 = vst.msk [vmem:[#allocation5] sm:$0xf] %vm758_vm3, %v1184_v36 }
 0x275 PF: > { %v761_v37 = vmul.f32 %v752_v34, %v752_v34  ;;  %v762_v38 = vmul.f32 %v753_v35, %v753_v35  ;;  %vm782_vm4 = vcmask 3072  }
 0x277   : > { %765 = vst [vmem:[#allocation1] ss:$2 sm:$0xff] %v761_v37 }
 0x278   : > { %767 = vst [vmem:[#allocation1 + $0x10] ss:$2 sm:$0xff] %v762_v38 }
 0x27b   : > { %v760_v45 = vld [vmem:[#allocation5] sm:$0xf] }
 0x27e   : > { %v768_v39 = vld.sshfl [vmem:[#allocation1] sm:$0xff pattern:$0x75316420]  ;;  %v769_v0 = vld.sshfl [vmem:[#allocation1 + $0x8] sm:$0xff pattern:$0x75316420] }
 0x27f   : > { %v770_v40 = vld.sshfl [vmem:[#allocation1 + $0x10] sm:$0xff pattern:$0x75316420]  ;;  %v774_v41 = vsel %vm749_vm1, %v768_v39, 0.0  ;;  %v775_v42 = vsel %vm749_vm1, %v769_v0, 0.0 }
 0x280   : > { %v776_v43 = vadd.f32 %v775_v42, %v774_v41  ;;  %v777_v44 = vsel %vm749_vm1, %v770_v40, 0.0 }
 0x282   : > { %v778_v11 = vadd.f32 %v777_v44, %v776_v43 }
 0x284   : > { %779 = vadd.xlane.f32.xlu0 %v778_v11 }
 0x2f7   : > { %v780_v12 = vpop.xlane.xlu0 %779 }
 0x2f8   : > { %v781_v46 = vadd.f32 %v780_v12, %v760_v45 }
 0x2fa   : > { %783 = vst.msk [vmem:[#allocation5] sm:$0xf] %vm782_vm4, %v781_v46 }
 0x2fb PF: > { %p1028_p13 = scmp.ne.s32.totalorder %s1152_s19, 2 }
 0x2fc   : > { %s1059_s26 = smul.u32 (!%p1028_p13), 12, %s1148_s18 }
 0x2fd   : > { %787 = sbr.rel (%p1028_p13) target bundleno = 926 (0x39e), region = 60 }
 0x2fe   : > { %s810_s27 = scalar_lea.vmem (!%p1028_p13), [#allocation2], %s1059_s26 }
 0x302   : > { %v790_v47 = vld [vmem:[#allocation5] sm:$0xf]  ;;  %v1185_v48 = vmov 0   ;;  %v788_v56 = vld [vmem:[#allocation4] sm:$0xf] }
 0x303   : > { %1123 = vset.pattern.permute.xlu0 %v1185_v48  ;;  %v791_v49 = vmul.f32 0.0015432099, %v790_v47  ;;  %v792_v57 = vld [vmem:[%s1367_s2] sm:$0xf]  ;;  %v789_v59 = vmul.f32 0.0015432099, %v788_v56 }
 0x304   : > { %v805_v63 = vld [vmem:[%s1368_s3] sm:$0xf]  ;;  %v1186_v2 = vmov 839922192   ;;  %v812_v8 = vld [vmem:[%s810_s27 + $0x8] sm:$0xf] }
 0x305   : > { %v793_v50 = vadd.f32 1e-05, %v791_v49  ;;  %v818_v3 = vunpack.c.l.s4 %v1186_v2  ;;  %v811_v7 = vld [vmem:[%s810_s27] sm:$0xff] }
 0x307   : > { %1124 = vrsqrt.f32 %v793_v50  ;;  %vm800_vm5 = vweird.f32 %v793_v50  ;;  %v819_v5 = vunpack.c.0.s8 %v818_v3 }
 0x30d   : > { %v1125_v51 = vpop.eup %1124 }
 0x30e   : > { %v795_v52 = vmul.f32 %v1125_v51, %v793_v50  ;;  %vm801_vm6 = vweird.f32 %v1125_v51 }
 0x30f   : > { %vm802_vm7 = vmor %vm800_vm5, %vm801_vm6 }
 0x310   : > { %v796_v53 = vmul.f32 %v1125_v51, %v795_v52 }
 0x312   : > { %v797_v54 = vmul.f32 0.5, %v796_v53 }
 0x314   : > { %v798_v55 = vsub.f32 1.5, %v797_v54 }
 0x316   : > { %v799_v58 = vmul.f32 %v1125_v51, %v798_v55 }
 0x318   : > { %v803_v60 = vsel %vm802_vm7, %v1125_v51, %v799_v58 }
 0x319   : > { %v804_v61 = vmul.f32 %v803_v60, %v792_v57 }
 0x31b   : > { %815 = vperm.xlu0 %1123, %v804_v61   ;;  %v806_v62 = vmul.f32 %v804_v61, %v789_v59 }
 0x31d   : > { %v807_v1 = vsub.f32 %v805_v63, %v806_v62 }
 0x323   : > { %826 = vperm.xlu0 %1123, %v807_v1  }
 0x38d   : > { %v816_v4 = vpop.permute.xlu0 %815 }
 0x38e   : > { %v820_v6 = vperm.slane %v816_v4, %v819_v5 }
 0x390   : > { %v822_v10 = vmul.f32 %v820_v6, %v811_v7  ;;  %v823_v13 = vmul.f32 %v820_v6, %v812_v8 }
 0x395   : > { %v827_v9 = vpop.permute.xlu0 %826 }
 0x396   : > { %v831_v14 = vperm.slane %v827_v9, %v819_v5 }
 0x398   : > { %v833_v15 = vadd.f32 %v831_v14, %v822_v10  ;;  %v834_v16 = vadd.f32 %v831_v14, %v823_v13 }
 0x39a   : > { %v835_v17 = vmax.f32 %v833_v15, 0.0  ;;  %v836_v18 = vmax.f32 %v834_v16, 0.0 }
 0x39c   : > { %837 = vst [vmem:[%s1266_s11] sm:$0xff] %v835_v17 }
 0x39d   : > { %838 = vst [vmem:[%s1266_s11 + $0x8] sm:$0xf] %v836_v18 }
 0x39e PF: > { %s15_s22 = sadd.s32 1, %s1164_s22   ;;  %s1371_s18 = smov %s1156_s20 }
 0x39f   : > { %p12_p0 = scmp.ge.s32.totalorder %s15_s22, 8   ;;  %s1372_s19 = smov %s1160_s21 }
 0x3a0   : > { %s1373_s20 = smov %s1376_s23  ;;  %s1374_s21 = smov %s1380_s24 }
 0x3a1   :  { %14 = sbr.rel (!%p12_p0) target bundleno = 3 (0x3), region = 94 }

</bundles_post_ra>
